<compile_context>
chip_gen: v5e
topology: v5e:2x2
jax: 0.10.0
libtpu: 0.0.40
codegen_flags: <defaults>
</compile_context>

<pallas_src>
import math

import jax
import jax.numpy as jnp
from jax import lax
from jax.experimental import pallas as pl
from jax.experimental.pallas import tpu as pltpu

# ---- static hyper-parameters (match the PyTorch module defaults) ----
KS = 129                      # conv kernel size
PAD = KS // 2                 # 64 -> "same" output length
NUM_GABOR = 4
NUM_FOURIER = 4
NUM_FILTERS = NUM_GABOR + NUM_FOURIER   # C = 8
NUM_CLASSES = 5
NUM_BASES = 16
SAMPLE_RATE = 100.0
LANE = 128                    # TPU lane width == time-tile size


def _cdiv(a, b):
    return -(-a // b)


def _round_up(a, m):
    return _cdiv(a, m) * m


# ---------------- parameters (deterministic, matching __init__ shapes) ----
def make_params(key):
    k_a, k_b, k_p = jax.random.split(key, 3)
    return dict(
        # GaborFilterBank
        A=jnp.ones((NUM_GABOR,), jnp.float32),
        mu=jnp.zeros((NUM_GABOR,), jnp.float32),
        sigma=jnp.ones((NUM_GABOR,), jnp.float32) * 0.1,
        f=jnp.linspace(1.0, 15.0, NUM_GABOR).astype(jnp.float32),
        phi=jnp.zeros((NUM_GABOR,), jnp.float32),
        # FourierFilterBank
        a=jax.random.normal(k_a, (NUM_FOURIER, NUM_BASES), jnp.float32) * 0.1,
        b=jax.random.normal(k_b, (NUM_FOURIER, NUM_BASES), jnp.float32) * 0.1,
        # SleepStageNet prototypes (num_classes, C)
        prototypes=jax.random.normal(k_p, (NUM_CLASSES, NUM_FILTERS),
                                     jnp.float32) * 0.1,
    )


def build_filter_kernels(params):
    """Build the (8, 129) conv taps: [gabor(4) ; fourier(4)] (plain JAX glue)."""
    # torch.linspace(-kernel_size // 2, kernel_size // 2, steps=kernel_size)
    t = jnp.linspace(-65.0, 64.0, KS) / SAMPLE_RATE          # (129,)
    t_row = t[None, :]                                       # (1, 129)

    # Gabor filters
    A = params["A"][:, None]
    mu = params["mu"][:, None]
    sigma = jnp.abs(params["sigma"][:, None]) + 0.001
    f = jnp.clip(params["f"][:, None], 0.1, 30.0)
    phi = params["phi"][:, None]
    gauss = jnp.exp(-(t_row - mu) ** 2 / (2.0 * sigma ** 2))
    sinus = jnp.cos(2.0 * jnp.pi * f * t_row + phi)
    gabor_k = A * gauss * sinus                              # (4, 129)

    # Fourier filters
    freqs = jnp.linspace(0.5, 30.0, NUM_BASES).astype(jnp.float32)[:, None]
    cos_b = jnp.cos(2.0 * jnp.pi * freqs * t_row)            # (16, 129)
    sin_b = jnp.sin(2.0 * jnp.pi * freqs * t_row)            # (16, 129)
    fourier_k = (params["a"][:, :, None] * cos_b[None]
                 + params["b"][:, :, None] * sin_b[None]).sum(axis=1)  # (4,129)

    return jnp.concatenate([gabor_k, fourier_k], axis=0)     # (8, 129)


def build_sheared_weights(kern):
    """Fold the conv's tap-shift structure into an MXU weight matrix.

    W[m, f*LANE + j] = kern[f, m - j]  for 0 <= m - j < KS else 0, so that for
    any 128-aligned output tile starting at t0,
        feats[f, t0 + j] = sum_m x_pad[t0 + m] * W[m, f*LANE + j].
    """
    m_idx = jnp.arange(2 * LANE)[:, None]          # (256, 1)
    j_idx = jnp.arange(LANE)[None, :]              # (1, 128)
    d = m_idx - j_idx                              # (256, 128)
    valid = (d >= 0) & (d < KS)
    d_safe = jnp.clip(d, 0, KS - 1)
    w = jnp.where(valid[None, :, :], kern[:, d_safe], 0.0)   # (F, 256, 128)
    return jnp.transpose(w, (1, 0, 2)).reshape(2 * LANE, NUM_FILTERS * LANE)


# ---------------- Pallas kernel (hot path: the filter-bank conv) ----------
def _make_filterbank_kernel(it, batch, t_valid):
    nf, lane = NUM_FILTERS, LANE

    def kernel(x_ref, w_ref, feats_ref, psum_ref):
        # x_ref     : (it*batch, 2*LANE)   bf16  rows ordered (time-tile, batch)
        # w_ref     : (2*LANE, nf*LANE)    bf16  pre-sheared filter bank (const)
        # feats_ref : (batch, nf, it*LANE)       conv features for this block
        # psum_ref  : (1, batch, nf)       f32   masked time-sums for this step
        #
        # ONE big MXU matmul per grid step (M = it*batch rows).
        res = jnp.dot(x_ref[...], w_ref[...],
                      preferred_element_type=jnp.float32)    # (it*batch, nf*128)
        # De-interleave the 8 filters from lane blocks into a sublane dim with
        # a single relayout for the whole block.
        res3 = res.reshape(it * batch, nf, lane)              # (it*batch, 8, 128)

        g = pl.program_id(0)
        lane_idx = lax.broadcasted_iota(jnp.int32, (1, 1, lane), 2)
        acc = jnp.zeros((batch, nf), jnp.float32)
        for tl in range(it):                                  # static unroll
            slab = res3[tl * batch:(tl + 1) * batch]          # (batch, 8, 128)
            # One aligned (8,128)-tile slab store per time tile (no per-filter
            # masked column stores).
            feats_ref[:, :, tl * lane:(tl + 1) * lane] = \
                slab.astype(feats_ref.dtype)
            # f32 partial time-sums, masked to the true signal length, so the
            # wrapper never has to re-read feats from HBM for the mean.
            t0 = (g * it + tl) * lane
            valid = (t0 + lane_idx) < t_valid
            acc = acc + jnp.sum(jnp.where(valid, slab, 0.0), axis=2)
        psum_ref[0, :, :] = acc

    return kernel


def _choose_tiling(n_tiles, batch, tiles_per_step):
    # Keep the matmul/store row dim (it*batch) a multiple of 16 so bf16 blocks
    # stay sublane-aligned.
    align = 16 // math.gcd(batch, 16)
    if tiles_per_step is None:
        tiles_per_step = _cdiv(256, batch)     # target >=256 MXU rows (v6e/v7x)
    tiles_per_step = max(1, min(tiles_per_step, 64))
    it = _round_up(max(1, min(tiles_per_step, n_tiles)), align)
    grid = _cdiv(n_tiles, it)
    # Expose >=2 grid steps when cheap so both v7x TensorCores get work under
    # megacore sharding (no-op on single-TC v5e/v6e).
    if grid == 1 and it >= 2 * align:
        it = _round_up(_cdiv(n_tiles, 2), align)
        grid = _cdiv(n_tiles, it)
    return it, grid


# ---------------- wrapper -------------------------------------------------
def sleep_stage_net(x, params, *, tiles_per_step=None,
                    feats_dtype=jnp.bfloat16):
    """x: (B, 1, T) float32  ->  (logits (B,5), feats (B,8,T), c (B,8)).

    feats is emitted in bf16 by default (halves the dominant HBM write); pass
    feats_dtype=jnp.float32 for a bit-heavier but closer-to-f32 output.
    """
    B, _, T = x.shape
    n_tiles = _cdiv(T, LANE)
    it, grid = _choose_tiling(n_tiles, B, tiles_per_step)
    n_tiles_p = grid * it                       # padded tile count (no shrink)
    Tp = n_tiles_p * LANE

    # Filter taps (8, 129) -> pre-sheared MXU weights (256, 8*128), bf16.
    kern = build_filter_kernels(params)
    w = build_sheared_weights(kern).astype(jnp.bfloat16)

    # Overlapped 128-sample chunks of the zero-padded signal, flattened so the
    # matmul M dim stacks (time-tile, batch):
    #   xs[i*B + b, m] = x_pad[b, i*128 + m],  m in [0, 256).
    x_pad = jnp.pad(x[:, 0, :], ((0, 0), (PAD, PAD + Tp - T)))   # (B, Tp+128)
    chunks = x_pad.reshape(B, n_tiles_p + 1, LANE)
    xs = jnp.concatenate([chunks[:, :-1, :], chunks[:, 1:, :]], axis=-1)
    xs = jnp.transpose(xs, (1, 0, 2)).reshape(n_tiles_p * B, 2 * LANE)
    xs = xs.astype(jnp.bfloat16)

    kernel = _make_filterbank_kernel(it, B, T)
    # Per-step working set (double-buffered xs + feats blocks, W, f32 matmul
    # result) is ~1-4 MiB: well under default scoped VMEM on v5e/v6e/v7x.
    feats_p, psum = pl.pallas_call(
        kernel,
        out_shape=(
            jax.ShapeDtypeStruct((B, NUM_FILTERS, Tp), feats_dtype),
            jax.ShapeDtypeStruct((grid, B, NUM_FILTERS), jnp.float32),
        ),
        grid_spec=pltpu.PrefetchScalarGridSpec(
            num_scalar_prefetch=0,
            grid=(grid,),
            in_specs=[
                pl.BlockSpec((it * B, 2 * LANE), lambda g: (g, 0)),
                pl.BlockSpec((2 * LANE, NUM_FILTERS * LANE), lambda g: (0, 0)),
            ],
            out_specs=[
                pl.BlockSpec((B, NUM_FILTERS, it * LANE), lambda g: (0, 0, g)),
                pl.BlockSpec((1, B, NUM_FILTERS), lambda g: (g, 0, 0)),
            ],
        ),
        compiler_params=pltpu.CompilerParams(
            dimension_semantics=("parallel",)),
    )(xs, w)

    feats = feats_p if Tp == T else feats_p[:, :, :T]   # drop lane padding
    # Temporal mean from the kernel's masked f32 partial sums (no HBM re-read
    # of feats); the tiny (B,8)x(8,5) prototype matmul stays in plain XLA.
    c = psum.sum(axis=0) / jnp.float32(T)                # (B, 8)
    logits = c @ params["prototypes"].T                  # (B, 5)
    return logits, feats, c


# ---------------- demo / self-check ---------------------------------------
if __name__ == "__main__":
    key = jax.random.PRNGKey(0)
    kx, kp = jax.random.split(key)
    B, T = 2, 3000           # one 30 s epoch @ 100 Hz (the module's natural input)
    x = jax.random.normal(kx, (B, 1, T), jnp.float32)
    params = make_params(kp)

    logits, feats, c = jax.block_until_ready(sleep_stage_net(x, params))

    # Reference built from the SAME bf16-rounded operands the kernel uses
    # (bf16*bf16 products are exact in f32, so only accumulation order and the
    # bf16 feats output rounding differ).
    kern129 = build_filter_kernels(params)                    # (8, 129)
    xb = x.astype(jnp.bfloat16).astype(jnp.float32)
    kb = kern129.astype(jnp.bfloat16).astype(jnp.float32)
    ref_feats = lax.conv_general_dilated(
        xb, kb[:, None, :], window_strides=(1,),
        padding=[(PAD, PAD)], dimension_numbers=("NCH", "OIH", "NCH"),
        precision=lax.Precision.HIGHEST)
    ref_c = ref_feats.mean(axis=2)
    ref_logits = ref_c @ params["prototypes"].T

    assert feats.shape == (B, NUM_FILTERS, T)
    assert c.shape == (B, NUM_FILTERS)
    assert logits.shape == (B, NUM_CLASSES)
    # feats is bf16 (deliberate perf trade) -> wider tolerance.
    assert jnp.allclose(feats.astype(jnp.float32), ref_feats,
                        atol=3e-2, rtol=3e-2)
    # c / logits come from in-kernel f32 partial sums -> tight tolerance.
    assert jnp.allclose(c, ref_c, atol=2e-3, rtol=2e-3)
    assert jnp.allclose(logits, ref_logits, atol=2e-3, rtol=2e-3)

    print("KERNEL_OK")
</pallas_src>

<mosaic_0001>
module attributes {stable_mosaic.version = 11 : i64} {
  func.func @kernel(%arg0: i32, %arg1: memref<32x256xbf16, #tpu.memory_space<vmem>>, %arg2: memref<256x1024xbf16, #tpu.memory_space<vmem>>, %arg3: memref<2x8x2048xbf16, #tpu.memory_space<vmem>>, %arg4: memref<1x2x8xf32, #tpu.memory_space<vmem>>) attributes {dimension_semantics = [#tpu.dimension_semantics<parallel>], iteration_bounds = array<i64: 2>, scalar_prefetch = 0 : i64, scratch_operands = 0 : i64, tpu.core_type = #tpu.core_type<tc>, window_params = [{transform_indices = @transform_0, window_bounds = array<i64: 32, 256>}, {pipeline_mode = #tpu.pipeline_mode<synchronous>, transform_indices = @transform_1, window_bounds = array<i64: 256, 1024>}, {transform_indices = @transform_2, window_bounds = array<i64: 2, 8, 2048>}, {transform_indices = @transform_3, window_bounds = array<i64: 1, 2, 8>}]} {
    %c0 = arith.constant 0 : index
    %c0_0 = arith.constant 0 : index
    %0 = vector.load %arg1[%c0, %c0_0] : memref<32x256xbf16, #tpu.memory_space<vmem>>, vector<32x256xbf16>
    %c0_1 = arith.constant 0 : index
    %c0_2 = arith.constant 0 : index
    %1 = vector.load %arg2[%c0_1, %c0_2] : memref<256x1024xbf16, #tpu.memory_space<vmem>>, vector<256x1024xbf16>
    %cst = arith.constant dense<0.000000e+00> : vector<32x1024xf32>
    %2 = tpu.matmul %0, %1, %cst {dimension_numbers = #tpu.dot_dimension_numbers<[1], [0], [0], [1], [0, 0, 1, 1], [], []>} : vector<32x256xbf16>, vector<256x1024xbf16>, vector<32x1024xf32> -> vector<32x1024xf32>
    %3 = vector.shape_cast %2 : vector<32x1024xf32> to vector<32x8x128xf32>
    %4 = tpu.iota {dimensions = array<i32: 2>} : vector<1x1x128xi32>
    %cst_3 = arith.constant 0.000000e+00 : f32
    %5 = vector.broadcast %cst_3 : f32 to vector<2x8xf32>
    %6 = vector.extract_strided_slice %3 {offsets = [0, 0, 0], sizes = [2, 8, 128], strides = [1, 1, 1]} : vector<32x8x128xf32> to vector<2x8x128xf32>
    %7 = arith.truncf %6 : vector<2x8x128xf32> to vector<2x8x128xbf16>
    %c0_4 = arith.constant 0 : index
    %c0_5 = arith.constant 0 : index
    %c0_6 = arith.constant 0 : index
    %8 = vector.load %arg3[%c0_4, %c0_5, %c0_6] : memref<2x8x2048xbf16, #tpu.memory_space<vmem>>, vector<2x8x128xbf16>
    tpu.vector_store %arg3[%c0_4, %c0_5, %c0_6], %7 {strides = array<i32>} : memref<2x8x2048xbf16, #tpu.memory_space<vmem>>, vector<2x8x128xbf16>,
    %c16_i32 = arith.constant 16 : i32
    %9 = arith.muli %arg0, %c16_i32 : i32
    %c0_i32 = arith.constant 0 : i32
    %10 = arith.addi %9, %c0_i32 : i32
    %c128_i32 = arith.constant 128 : i32
    %11 = arith.muli %10, %c128_i32 : i32
    %12 = vector.broadcast %11 : i32 to vector<1x1x128xi32>
    %13 = arith.addi %12, %4 : vector<1x1x128xi32>
    %c3000_i32 = arith.constant 3000 : i32
    %14 = vector.broadcast %c3000_i32 : i32 to vector<1x1x128xi32>
    %15 = arith.cmpi slt, %13, %14 : vector<1x1x128xi32>
    %cst_7 = arith.constant 0.000000e+00 : f32
    %16 = vector.shape_cast %15 : vector<1x1x128xi1> to vector<1x1x128xi1>
    %17 = vector.broadcast %16 : vector<1x1x128xi1> to vector<2x8x128xi1>
    %18 = vector.broadcast %cst_7 : f32 to vector<2x8x128xf32>
    %19 = arith.select %17, %6, %18 : vector<2x8x128xi1>, vector<2x8x128xf32>
    %cst_8 = arith.constant dense<0.000000e+00> : vector<2x8xf32>
    %20 = vector.multi_reduction <add>, %19, %cst_8 [2] : vector<2x8x128xf32> to vector<2x8xf32>
    %21 = arith.addf %5, %20 : vector<2x8xf32>
    %22 = vector.extract_strided_slice %3 {offsets = [2, 0, 0], sizes = [2, 8, 128], strides = [1, 1, 1]} : vector<32x8x128xf32> to vector<2x8x128xf32>
    %23 = arith.truncf %22 : vector<2x8x128xf32> to vector<2x8x128xbf16>
    %c0_9 = arith.constant 0 : index
    %c0_10 = arith.constant 0 : index
    %c128 = arith.constant 128 : index
    %24 = vector.load %arg3[%c0_9, %c0_10, %c128] : memref<2x8x2048xbf16, #tpu.memory_space<vmem>>, vector<2x8x128xbf16>
    tpu.vector_store %arg3[%c0_9, %c0_10, %c128], %23 {strides = array<i32>} : memref<2x8x2048xbf16, #tpu.memory_space<vmem>>, vector<2x8x128xbf16>,
    %c16_i32_11 = arith.constant 16 : i32
    %25 = arith.muli %arg0, %c16_i32_11 : i32
    %c1_i32 = arith.constant 1 : i32
    %26 = arith.addi %25, %c1_i32 : i32
    %c128_i32_12 = arith.constant 128 : i32
    %27 = arith.muli %26, %c128_i32_12 : i32
    %28 = vector.broadcast %27 : i32 to vector<1x1x128xi32>
    %29 = arith.addi %28, %4 : vector<1x1x128xi32>
    %c3000_i32_13 = arith.constant 3000 : i32
    %30 = vector.broadcast %c3000_i32_13 : i32 to vector<1x1x128xi32>
    %31 = arith.cmpi slt, %29, %30 : vector<1x1x128xi32>
    %cst_14 = arith.constant 0.000000e+00 : f32
    %32 = vector.shape_cast %31 : vector<1x1x128xi1> to vector<1x1x128xi1>
    %33 = vector.broadcast %32 : vector<1x1x128xi1> to vector<2x8x128xi1>
    %34 = vector.broadcast %cst_14 : f32 to vector<2x8x128xf32>
    %35 = arith.select %33, %22, %34 : vector<2x8x128xi1>, vector<2x8x128xf32>
    %cst_15 = arith.constant dense<0.000000e+00> : vector<2x8xf32>
    %36 = vector.multi_reduction <add>, %35, %cst_15 [2] : vector<2x8x128xf32> to vector<2x8xf32>
    %37 = arith.addf %21, %36 : vector<2x8xf32>
    %38 = vector.extract_strided_slice %3 {offsets = [4, 0, 0], sizes = [2, 8, 128], strides = [1, 1, 1]} : vector<32x8x128xf32> to vector<2x8x128xf32>
    %39 = arith.truncf %38 : vector<2x8x128xf32> to vector<2x8x128xbf16>
    %c0_16 = arith.constant 0 : index
    %c0_17 = arith.constant 0 : index
    %c256 = arith.constant 256 : index
    %40 = vector.load %arg3[%c0_16, %c0_17, %c256] : memref<2x8x2048xbf16, #tpu.memory_space<vmem>>, vector<2x8x128xbf16>
    tpu.vector_store %arg3[%c0_16, %c0_17, %c256], %39 {strides = array<i32>} : memref<2x8x2048xbf16, #tpu.memory_space<vmem>>, vector<2x8x128xbf16>,
    %c16_i32_18 = arith.constant 16 : i32
    %41 = arith.muli %arg0, %c16_i32_18 : i32
    %c2_i32 = arith.constant 2 : i32
    %42 = arith.addi %41, %c2_i32 : i32
    %c128_i32_19 = arith.constant 128 : i32
    %43 = arith.muli %42, %c128_i32_19 : i32
    %44 = vector.broadcast %43 : i32 to vector<1x1x128xi32>
    %45 = arith.addi %44, %4 : vector<1x1x128xi32>
    %c3000_i32_20 = arith.constant 3000 : i32
    %46 = vector.broadcast %c3000_i32_20 : i32 to vector<1x1x128xi32>
    %47 = arith.cmpi slt, %45, %46 : vector<1x1x128xi32>
    %cst_21 = arith.constant 0.000000e+00 : f32
    %48 = vector.shape_cast %47 : vector<1x1x128xi1> to vector<1x1x128xi1>
    %49 = vector.broadcast %48 : vector<1x1x128xi1> to vector<2x8x128xi1>
    %50 = vector.broadcast %cst_21 : f32 to vector<2x8x128xf32>
    %51 = arith.select %49, %38, %50 : vector<2x8x128xi1>, vector<2x8x128xf32>
    %cst_22 = arith.constant dense<0.000000e+00> : vector<2x8xf32>
    %52 = vector.multi_reduction <add>, %51, %cst_22 [2] : vector<2x8x128xf32> to vector<2x8xf32>
    %53 = arith.addf %37, %52 : vector<2x8xf32>
    %54 = vector.extract_strided_slice %3 {offsets = [6, 0, 0], sizes = [2, 8, 128], strides = [1, 1, 1]} : vector<32x8x128xf32> to vector<2x8x128xf32>
    %55 = arith.truncf %54 : vector<2x8x128xf32> to vector<2x8x128xbf16>
    %c0_23 = arith.constant 0 : index
    %c0_24 = arith.constant 0 : index
    %c384 = arith.constant 384 : index
    %56 = vector.load %arg3[%c0_23, %c0_24, %c384] : memref<2x8x2048xbf16, #tpu.memory_space<vmem>>, vector<2x8x128xbf16>
    tpu.vector_store %arg3[%c0_23, %c0_24, %c384], %55 {strides = array<i32>} : memref<2x8x2048xbf16, #tpu.memory_space<vmem>>, vector<2x8x128xbf16>,
    %c16_i32_25 = arith.constant 16 : i32
    %57 = arith.muli %arg0, %c16_i32_25 : i32
    %c3_i32 = arith.constant 3 : i32
    %58 = arith.addi %57, %c3_i32 : i32
    %c128_i32_26 = arith.constant 128 : i32
    %59 = arith.muli %58, %c128_i32_26 : i32
    %60 = vector.broadcast %59 : i32 to vector<1x1x128xi32>
    %61 = arith.addi %60, %4 : vector<1x1x128xi32>
    %c3000_i32_27 = arith.constant 3000 : i32
    %62 = vector.broadcast %c3000_i32_27 : i32 to vector<1x1x128xi32>
    %63 = arith.cmpi slt, %61, %62 : vector<1x1x128xi32>
    %cst_28 = arith.constant 0.000000e+00 : f32
    %64 = vector.shape_cast %63 : vector<1x1x128xi1> to vector<1x1x128xi1>
    %65 = vector.broadcast %64 : vector<1x1x128xi1> to vector<2x8x128xi1>
    %66 = vector.broadcast %cst_28 : f32 to vector<2x8x128xf32>
    %67 = arith.select %65, %54, %66 : vector<2x8x128xi1>, vector<2x8x128xf32>
    %cst_29 = arith.constant dense<0.000000e+00> : vector<2x8xf32>
    %68 = vector.multi_reduction <add>, %67, %cst_29 [2] : vector<2x8x128xf32> to vector<2x8xf32>
    %69 = arith.addf %53, %68 : vector<2x8xf32>
    %70 = vector.extract_strided_slice %3 {offsets = [8, 0, 0], sizes = [2, 8, 128], strides = [1, 1, 1]} : vector<32x8x128xf32> to vector<2x8x128xf32>
    %71 = arith.truncf %70 : vector<2x8x128xf32> to vector<2x8x128xbf16>
    %c0_30 = arith.constant 0 : index
    %c0_31 = arith.constant 0 : index
    %c512 = arith.constant 512 : index
    %72 = vector.load %arg3[%c0_30, %c0_31, %c512] : memref<2x8x2048xbf16, #tpu.memory_space<vmem>>, vector<2x8x128xbf16>
    tpu.vector_store %arg3[%c0_30, %c0_31, %c512], %71 {strides = array<i32>} : memref<2x8x2048xbf16, #tpu.memory_space<vmem>>, vector<2x8x128xbf16>,
    %c16_i32_32 = arith.constant 16 : i32
    %73 = arith.muli %arg0, %c16_i32_32 : i32
    %c4_i32 = arith.constant 4 : i32
    %74 = arith.addi %73, %c4_i32 : i32
    %c128_i32_33 = arith.constant 128 : i32
    %75 = arith.muli %74, %c128_i32_33 : i32
    %76 = vector.broadcast %75 : i32 to vector<1x1x128xi32>
    %77 = arith.addi %76, %4 : vector<1x1x128xi32>
    %c3000_i32_34 = arith.constant 3000 : i32
    %78 = vector.broadcast %c3000_i32_34 : i32 to vector<1x1x128xi32>
    %79 = arith.cmpi slt, %77, %78 : vector<1x1x128xi32>
    %cst_35 = arith.constant 0.000000e+00 : f32
    %80 = vector.shape_cast %79 : vector<1x1x128xi1> to vector<1x1x128xi1>
    %81 = vector.broadcast %80 : vector<1x1x128xi1> to vector<2x8x128xi1>
    %82 = vector.broadcast %cst_35 : f32 to vector<2x8x128xf32>
    %83 = arith.select %81, %70, %82 : vector<2x8x128xi1>, vector<2x8x128xf32>
    %cst_36 = arith.constant dense<0.000000e+00> : vector<2x8xf32>
    %84 = vector.multi_reduction <add>, %83, %cst_36 [2] : vector<2x8x128xf32> to vector<2x8xf32>
    %85 = arith.addf %69, %84 : vector<2x8xf32>
    %86 = vector.extract_strided_slice %3 {offsets = [10, 0, 0], sizes = [2, 8, 128], strides = [1, 1, 1]} : vector<32x8x128xf32> to vector<2x8x128xf32>
    %87 = arith.truncf %86 : vector<2x8x128xf32> to vector<2x8x128xbf16>
    %c0_37 = arith.constant 0 : index
    %c0_38 = arith.constant 0 : index
    %c640 = arith.constant 640 : index
    %88 = vector.load %arg3[%c0_37, %c0_38, %c640] : memref<2x8x2048xbf16, #tpu.memory_space<vmem>>, vector<2x8x128xbf16>
    tpu.vector_store %arg3[%c0_37, %c0_38, %c640], %87 {strides = array<i32>} : memref<2x8x2048xbf16, #tpu.memory_space<vmem>>, vector<2x8x128xbf16>,
    %c16_i32_39 = arith.constant 16 : i32
    %89 = arith.muli %arg0, %c16_i32_39 : i32
    %c5_i32 = arith.constant 5 : i32
    %90 = arith.addi %89, %c5_i32 : i32
    %c128_i32_40 = arith.constant 128 : i32
    %91 = arith.muli %90, %c128_i32_40 : i32
    %92 = vector.broadcast %91 : i32 to vector<1x1x128xi32>
    %93 = arith.addi %92, %4 : vector<1x1x128xi32>
    %c3000_i32_41 = arith.constant 3000 : i32
    %94 = vector.broadcast %c3000_i32_41 : i32 to vector<1x1x128xi32>
    %95 = arith.cmpi slt, %93, %94 : vector<1x1x128xi32>
    %cst_42 = arith.constant 0.000000e+00 : f32
    %96 = vector.shape_cast %95 : vector<1x1x128xi1> to vector<1x1x128xi1>
    %97 = vector.broadcast %96 : vector<1x1x128xi1> to vector<2x8x128xi1>
    %98 = vector.broadcast %cst_42 : f32 to vector<2x8x128xf32>
    %99 = arith.select %97, %86, %98 : vector<2x8x128xi1>, vector<2x8x128xf32>
    %cst_43 = arith.constant dense<0.000000e+00> : vector<2x8xf32>
    %100 = vector.multi_reduction <add>, %99, %cst_43 [2] : vector<2x8x128xf32> to vector<2x8xf32>
    %101 = arith.addf %85, %100 : vector<2x8xf32>
    %102 = vector.extract_strided_slice %3 {offsets = [12, 0, 0], sizes = [2, 8, 128], strides = [1, 1, 1]} : vector<32x8x128xf32> to vector<2x8x128xf32>
    %103 = arith.truncf %102 : vector<2x8x128xf32> to vector<2x8x128xbf16>
    %c0_44 = arith.constant 0 : index
    %c0_45 = arith.constant 0 : index
    %c768 = arith.constant 768 : index
    %104 = vector.load %arg3[%c0_44, %c0_45, %c768] : memref<2x8x2048xbf16, #tpu.memory_space<vmem>>, vector<2x8x128xbf16>
    tpu.vector_store %arg3[%c0_44, %c0_45, %c768], %103 {strides = array<i32>} : memref<2x8x2048xbf16, #tpu.memory_space<vmem>>, vector<2x8x128xbf16>,
    %c16_i32_46 = arith.constant 16 : i32
    %105 = arith.muli %arg0, %c16_i32_46 : i32
    %c6_i32 = arith.constant 6 : i32
    %106 = arith.addi %105, %c6_i32 : i32
    %c128_i32_47 = arith.constant 128 : i32
    %107 = arith.muli %106, %c128_i32_47 : i32
    %108 = vector.broadcast %107 : i32 to vector<1x1x128xi32>
    %109 = arith.addi %108, %4 : vector<1x1x128xi32>
    %c3000_i32_48 = arith.constant 3000 : i32
    %110 = vector.broadcast %c3000_i32_48 : i32 to vector<1x1x128xi32>
    %111 = arith.cmpi slt, %109, %110 : vector<1x1x128xi32>
    %cst_49 = arith.constant 0.000000e+00 : f32
    %112 = vector.shape_cast %111 : vector<1x1x128xi1> to vector<1x1x128xi1>
    %113 = vector.broadcast %112 : vector<1x1x128xi1> to vector<2x8x128xi1>
    %114 = vector.broadcast %cst_49 : f32 to vector<2x8x128xf32>
    %115 = arith.select %113, %102, %114 : vector<2x8x128xi1>, vector<2x8x128xf32>
    %cst_50 = arith.constant dense<0.000000e+00> : vector<2x8xf32>
    %116 = vector.multi_reduction <add>, %115, %cst_50 [2] : vector<2x8x128xf32> to vector<2x8xf32>
    %117 = arith.addf %101, %116 : vector<2x8xf32>
    %118 = vector.extract_strided_slice %3 {offsets = [14, 0, 0], sizes = [2, 8, 128], strides = [1, 1, 1]} : vector<32x8x128xf32> to vector<2x8x128xf32>
    %119 = arith.truncf %118 : vector<2x8x128xf32> to vector<2x8x128xbf16>
    %c0_51 = arith.constant 0 : index
    %c0_52 = arith.constant 0 : index
    %c896 = arith.constant 896 : index
    %120 = vector.load %arg3[%c0_51, %c0_52, %c896] : memref<2x8x2048xbf16, #tpu.memory_space<vmem>>, vector<2x8x128xbf16>
    tpu.vector_store %arg3[%c0_51, %c0_52, %c896], %119 {strides = array<i32>} : memref<2x8x2048xbf16, #tpu.memory_space<vmem>>, vector<2x8x128xbf16>,
    %c16_i32_53 = arith.constant 16 : i32
    %121 = arith.muli %arg0, %c16_i32_53 : i32
    %c7_i32 = arith.constant 7 : i32
    %122 = arith.addi %121, %c7_i32 : i32
    %c128_i32_54 = arith.constant 128 : i32
    %123 = arith.muli %122, %c128_i32_54 : i32
    %124 = vector.broadcast %123 : i32 to vector<1x1x128xi32>
    %125 = arith.addi %124, %4 : vector<1x1x128xi32>
    %c3000_i32_55 = arith.constant 3000 : i32
    %126 = vector.broadcast %c3000_i32_55 : i32 to vector<1x1x128xi32>
    %127 = arith.cmpi slt, %125, %126 : vector<1x1x128xi32>
    %cst_56 = arith.constant 0.000000e+00 : f32
    %128 = vector.shape_cast %127 : vector<1x1x128xi1> to vector<1x1x128xi1>
    %129 = vector.broadcast %128 : vector<1x1x128xi1> to vector<2x8x128xi1>
    %130 = vector.broadcast %cst_56 : f32 to vector<2x8x128xf32>
    %131 = arith.select %129, %118, %130 : vector<2x8x128xi1>, vector<2x8x128xf32>
    %cst_57 = arith.constant dense<0.000000e+00> : vector<2x8xf32>
    %132 = vector.multi_reduction <add>, %131, %cst_57 [2] : vector<2x8x128xf32> to vector<2x8xf32>
    %133 = arith.addf %117, %132 : vector<2x8xf32>
    %134 = vector.extract_strided_slice %3 {offsets = [16, 0, 0], sizes = [2, 8, 128], strides = [1, 1, 1]} : vector<32x8x128xf32> to vector<2x8x128xf32>
    %135 = arith.truncf %134 : vector<2x8x128xf32> to vector<2x8x128xbf16>
    %c0_58 = arith.constant 0 : index
    %c0_59 = arith.constant 0 : index
    %c1024 = arith.constant 1024 : index
    %136 = vector.load %arg3[%c0_58, %c0_59, %c1024] : memref<2x8x2048xbf16, #tpu.memory_space<vmem>>, vector<2x8x128xbf16>
    tpu.vector_store %arg3[%c0_58, %c0_59, %c1024], %135 {strides = array<i32>} : memref<2x8x2048xbf16, #tpu.memory_space<vmem>>, vector<2x8x128xbf16>,
    %c16_i32_60 = arith.constant 16 : i32
    %137 = arith.muli %arg0, %c16_i32_60 : i32
    %c8_i32 = arith.constant 8 : i32
    %138 = arith.addi %137, %c8_i32 : i32
    %c128_i32_61 = arith.constant 128 : i32
    %139 = arith.muli %138, %c128_i32_61 : i32
    %140 = vector.broadcast %139 : i32 to vector<1x1x128xi32>
    %141 = arith.addi %140, %4 : vector<1x1x128xi32>
    %c3000_i32_62 = arith.constant 3000 : i32
    %142 = vector.broadcast %c3000_i32_62 : i32 to vector<1x1x128xi32>
    %143 = arith.cmpi slt, %141, %142 : vector<1x1x128xi32>
    %cst_63 = arith.constant 0.000000e+00 : f32
    %144 = vector.shape_cast %143 : vector<1x1x128xi1> to vector<1x1x128xi1>
    %145 = vector.broadcast %144 : vector<1x1x128xi1> to vector<2x8x128xi1>
    %146 = vector.broadcast %cst_63 : f32 to vector<2x8x128xf32>
    %147 = arith.select %145, %134, %146 : vector<2x8x128xi1>, vector<2x8x128xf32>
    %cst_64 = arith.constant dense<0.000000e+00> : vector<2x8xf32>
    %148 = vector.multi_reduction <add>, %147, %cst_64 [2] : vector<2x8x128xf32> to vector<2x8xf32>
    %149 = arith.addf %133, %148 : vector<2x8xf32>
    %150 = vector.extract_strided_slice %3 {offsets = [18, 0, 0], sizes = [2, 8, 128], strides = [1, 1, 1]} : vector<32x8x128xf32> to vector<2x8x128xf32>
    %151 = arith.truncf %150 : vector<2x8x128xf32> to vector<2x8x128xbf16>
    %c0_65 = arith.constant 0 : index
    %c0_66 = arith.constant 0 : index
    %c1152 = arith.constant 1152 : index
    %152 = vector.load %arg3[%c0_65, %c0_66, %c1152] : memref<2x8x2048xbf16, #tpu.memory_space<vmem>>, vector<2x8x128xbf16>
    tpu.vector_store %arg3[%c0_65, %c0_66, %c1152], %151 {strides = array<i32>} : memref<2x8x2048xbf16, #tpu.memory_space<vmem>>, vector<2x8x128xbf16>,
    %c16_i32_67 = arith.constant 16 : i32
    %153 = arith.muli %arg0, %c16_i32_67 : i32
    %c9_i32 = arith.constant 9 : i32
    %154 = arith.addi %153, %c9_i32 : i32
    %c128_i32_68 = arith.constant 128 : i32
    %155 = arith.muli %154, %c128_i32_68 : i32
    %156 = vector.broadcast %155 : i32 to vector<1x1x128xi32>
    %157 = arith.addi %156, %4 : vector<1x1x128xi32>
    %c3000_i32_69 = arith.constant 3000 : i32
    %158 = vector.broadcast %c3000_i32_69 : i32 to vector<1x1x128xi32>
    %159 = arith.cmpi slt, %157, %158 : vector<1x1x128xi32>
    %cst_70 = arith.constant 0.000000e+00 : f32
    %160 = vector.shape_cast %159 : vector<1x1x128xi1> to vector<1x1x128xi1>
    %161 = vector.broadcast %160 : vector<1x1x128xi1> to vector<2x8x128xi1>
    %162 = vector.broadcast %cst_70 : f32 to vector<2x8x128xf32>
    %163 = arith.select %161, %150, %162 : vector<2x8x128xi1>, vector<2x8x128xf32>
    %cst_71 = arith.constant dense<0.000000e+00> : vector<2x8xf32>
    %164 = vector.multi_reduction <add>, %163, %cst_71 [2] : vector<2x8x128xf32> to vector<2x8xf32>
    %165 = arith.addf %149, %164 : vector<2x8xf32>
    %166 = vector.extract_strided_slice %3 {offsets = [20, 0, 0], sizes = [2, 8, 128], strides = [1, 1, 1]} : vector<32x8x128xf32> to vector<2x8x128xf32>
    %167 = arith.truncf %166 : vector<2x8x128xf32> to vector<2x8x128xbf16>
    %c0_72 = arith.constant 0 : index
    %c0_73 = arith.constant 0 : index
    %c1280 = arith.constant 1280 : index
    %168 = vector.load %arg3[%c0_72, %c0_73, %c1280] : memref<2x8x2048xbf16, #tpu.memory_space<vmem>>, vector<2x8x128xbf16>
    tpu.vector_store %arg3[%c0_72, %c0_73, %c1280], %167 {strides = array<i32>} : memref<2x8x2048xbf16, #tpu.memory_space<vmem>>, vector<2x8x128xbf16>,
    %c16_i32_74 = arith.constant 16 : i32
    %169 = arith.muli %arg0, %c16_i32_74 : i32
    %c10_i32 = arith.constant 10 : i32
    %170 = arith.addi %169, %c10_i32 : i32
    %c128_i32_75 = arith.constant 128 : i32
    %171 = arith.muli %170, %c128_i32_75 : i32
    %172 = vector.broadcast %171 : i32 to vector<1x1x128xi32>
    %173 = arith.addi %172, %4 : vector<1x1x128xi32>
    %c3000_i32_76 = arith.constant 3000 : i32
    %174 = vector.broadcast %c3000_i32_76 : i32 to vector<1x1x128xi32>
    %175 = arith.cmpi slt, %173, %174 : vector<1x1x128xi32>
    %cst_77 = arith.constant 0.000000e+00 : f32
    %176 = vector.shape_cast %175 : vector<1x1x128xi1> to vector<1x1x128xi1>
    %177 = vector.broadcast %176 : vector<1x1x128xi1> to vector<2x8x128xi1>
    %178 = vector.broadcast %cst_77 : f32 to vector<2x8x128xf32>
    %179 = arith.select %177, %166, %178 : vector<2x8x128xi1>, vector<2x8x128xf32>
    %cst_78 = arith.constant dense<0.000000e+00> : vector<2x8xf32>
    %180 = vector.multi_reduction <add>, %179, %cst_78 [2] : vector<2x8x128xf32> to vector<2x8xf32>
    %181 = arith.addf %165, %180 : vector<2x8xf32>
    %182 = vector.extract_strided_slice %3 {offsets = [22, 0, 0], sizes = [2, 8, 128], strides = [1, 1, 1]} : vector<32x8x128xf32> to vector<2x8x128xf32>
    %183 = arith.truncf %182 : vector<2x8x128xf32> to vector<2x8x128xbf16>
    %c0_79 = arith.constant 0 : index
    %c0_80 = arith.constant 0 : index
    %c1408 = arith.constant 1408 : index
    %184 = vector.load %arg3[%c0_79, %c0_80, %c1408] : memref<2x8x2048xbf16, #tpu.memory_space<vmem>>, vector<2x8x128xbf16>
    tpu.vector_store %arg3[%c0_79, %c0_80, %c1408], %183 {strides = array<i32>} : memref<2x8x2048xbf16, #tpu.memory_space<vmem>>, vector<2x8x128xbf16>,
    %c16_i32_81 = arith.constant 16 : i32
    %185 = arith.muli %arg0, %c16_i32_81 : i32
    %c11_i32 = arith.constant 11 : i32
    %186 = arith.addi %185, %c11_i32 : i32
    %c128_i32_82 = arith.constant 128 : i32
    %187 = arith.muli %186, %c128_i32_82 : i32
    %188 = vector.broadcast %187 : i32 to vector<1x1x128xi32>
    %189 = arith.addi %188, %4 : vector<1x1x128xi32>
    %c3000_i32_83 = arith.constant 3000 : i32
    %190 = vector.broadcast %c3000_i32_83 : i32 to vector<1x1x128xi32>
    %191 = arith.cmpi slt, %189, %190 : vector<1x1x128xi32>
    %cst_84 = arith.constant 0.000000e+00 : f32
    %192 = vector.shape_cast %191 : vector<1x1x128xi1> to vector<1x1x128xi1>
    %193 = vector.broadcast %192 : vector<1x1x128xi1> to vector<2x8x128xi1>
    %194 = vector.broadcast %cst_84 : f32 to vector<2x8x128xf32>
    %195 = arith.select %193, %182, %194 : vector<2x8x128xi1>, vector<2x8x128xf32>
    %cst_85 = arith.constant dense<0.000000e+00> : vector<2x8xf32>
    %196 = vector.multi_reduction <add>, %195, %cst_85 [2] : vector<2x8x128xf32> to vector<2x8xf32>
    %197 = arith.addf %181, %196 : vector<2x8xf32>
    %198 = vector.extract_strided_slice %3 {offsets = [24, 0, 0], sizes = [2, 8, 128], strides = [1, 1, 1]} : vector<32x8x128xf32> to vector<2x8x128xf32>
    %199 = arith.truncf %198 : vector<2x8x128xf32> to vector<2x8x128xbf16>
    %c0_86 = arith.constant 0 : index
    %c0_87 = arith.constant 0 : index
    %c1536 = arith.constant 1536 : index
    %200 = vector.load %arg3[%c0_86, %c0_87, %c1536] : memref<2x8x2048xbf16, #tpu.memory_space<vmem>>, vector<2x8x128xbf16>
    tpu.vector_store %arg3[%c0_86, %c0_87, %c1536], %199 {strides = array<i32>} : memref<2x8x2048xbf16, #tpu.memory_space<vmem>>, vector<2x8x128xbf16>,
    %c16_i32_88 = arith.constant 16 : i32
    %201 = arith.muli %arg0, %c16_i32_88 : i32
    %c12_i32 = arith.constant 12 : i32
    %202 = arith.addi %201, %c12_i32 : i32
    %c128_i32_89 = arith.constant 128 : i32
    %203 = arith.muli %202, %c128_i32_89 : i32
    %204 = vector.broadcast %203 : i32 to vector<1x1x128xi32>
    %205 = arith.addi %204, %4 : vector<1x1x128xi32>
    %c3000_i32_90 = arith.constant 3000 : i32
    %206 = vector.broadcast %c3000_i32_90 : i32 to vector<1x1x128xi32>
    %207 = arith.cmpi slt, %205, %206 : vector<1x1x128xi32>
    %cst_91 = arith.constant 0.000000e+00 : f32
    %208 = vector.shape_cast %207 : vector<1x1x128xi1> to vector<1x1x128xi1>
    %209 = vector.broadcast %208 : vector<1x1x128xi1> to vector<2x8x128xi1>
    %210 = vector.broadcast %cst_91 : f32 to vector<2x8x128xf32>
    %211 = arith.select %209, %198, %210 : vector<2x8x128xi1>, vector<2x8x128xf32>
    %cst_92 = arith.constant dense<0.000000e+00> : vector<2x8xf32>
    %212 = vector.multi_reduction <add>, %211, %cst_92 [2] : vector<2x8x128xf32> to vector<2x8xf32>
    %213 = arith.addf %197, %212 : vector<2x8xf32>
    %214 = vector.extract_strided_slice %3 {offsets = [26, 0, 0], sizes = [2, 8, 128], strides = [1, 1, 1]} : vector<32x8x128xf32> to vector<2x8x128xf32>
    %215 = arith.truncf %214 : vector<2x8x128xf32> to vector<2x8x128xbf16>
    %c0_93 = arith.constant 0 : index
    %c0_94 = arith.constant 0 : index
    %c1664 = arith.constant 1664 : index
    %216 = vector.load %arg3[%c0_93, %c0_94, %c1664] : memref<2x8x2048xbf16, #tpu.memory_space<vmem>>, vector<2x8x128xbf16>
    tpu.vector_store %arg3[%c0_93, %c0_94, %c1664], %215 {strides = array<i32>} : memref<2x8x2048xbf16, #tpu.memory_space<vmem>>, vector<2x8x128xbf16>,
    %c16_i32_95 = arith.constant 16 : i32
    %217 = arith.muli %arg0, %c16_i32_95 : i32
    %c13_i32 = arith.constant 13 : i32
    %218 = arith.addi %217, %c13_i32 : i32
    %c128_i32_96 = arith.constant 128 : i32
    %219 = arith.muli %218, %c128_i32_96 : i32
    %220 = vector.broadcast %219 : i32 to vector<1x1x128xi32>
    %221 = arith.addi %220, %4 : vector<1x1x128xi32>
    %c3000_i32_97 = arith.constant 3000 : i32
    %222 = vector.broadcast %c3000_i32_97 : i32 to vector<1x1x128xi32>
    %223 = arith.cmpi slt, %221, %222 : vector<1x1x128xi32>
    %cst_98 = arith.constant 0.000000e+00 : f32
    %224 = vector.shape_cast %223 : vector<1x1x128xi1> to vector<1x1x128xi1>
    %225 = vector.broadcast %224 : vector<1x1x128xi1> to vector<2x8x128xi1>
    %226 = vector.broadcast %cst_98 : f32 to vector<2x8x128xf32>
    %227 = arith.select %225, %214, %226 : vector<2x8x128xi1>, vector<2x8x128xf32>
    %cst_99 = arith.constant dense<0.000000e+00> : vector<2x8xf32>
    %228 = vector.multi_reduction <add>, %227, %cst_99 [2] : vector<2x8x128xf32> to vector<2x8xf32>
    %229 = arith.addf %213, %228 : vector<2x8xf32>
    %230 = vector.extract_strided_slice %3 {offsets = [28, 0, 0], sizes = [2, 8, 128], strides = [1, 1, 1]} : vector<32x8x128xf32> to vector<2x8x128xf32>
    %231 = arith.truncf %230 : vector<2x8x128xf32> to vector<2x8x128xbf16>
    %c0_100 = arith.constant 0 : index
    %c0_101 = arith.constant 0 : index
    %c1792 = arith.constant 1792 : index
    %232 = vector.load %arg3[%c0_100, %c0_101, %c1792] : memref<2x8x2048xbf16, #tpu.memory_space<vmem>>, vector<2x8x128xbf16>
    tpu.vector_store %arg3[%c0_100, %c0_101, %c1792], %231 {strides = array<i32>} : memref<2x8x2048xbf16, #tpu.memory_space<vmem>>, vector<2x8x128xbf16>,
    %c16_i32_102 = arith.constant 16 : i32
    %233 = arith.muli %arg0, %c16_i32_102 : i32
    %c14_i32 = arith.constant 14 : i32
    %234 = arith.addi %233, %c14_i32 : i32
    %c128_i32_103 = arith.constant 128 : i32
    %235 = arith.muli %234, %c128_i32_103 : i32
    %236 = vector.broadcast %235 : i32 to vector<1x1x128xi32>
    %237 = arith.addi %236, %4 : vector<1x1x128xi32>
    %c3000_i32_104 = arith.constant 3000 : i32
    %238 = vector.broadcast %c3000_i32_104 : i32 to vector<1x1x128xi32>
    %239 = arith.cmpi slt, %237, %238 : vector<1x1x128xi32>
    %cst_105 = arith.constant 0.000000e+00 : f32
    %240 = vector.shape_cast %239 : vector<1x1x128xi1> to vector<1x1x128xi1>
    %241 = vector.broadcast %240 : vector<1x1x128xi1> to vector<2x8x128xi1>
    %242 = vector.broadcast %cst_105 : f32 to vector<2x8x128xf32>
    %243 = arith.select %241, %230, %242 : vector<2x8x128xi1>, vector<2x8x128xf32>
    %cst_106 = arith.constant dense<0.000000e+00> : vector<2x8xf32>
    %244 = vector.multi_reduction <add>, %243, %cst_106 [2] : vector<2x8x128xf32> to vector<2x8xf32>
    %245 = arith.addf %229, %244 : vector<2x8xf32>
    %246 = vector.extract_strided_slice %3 {offsets = [30, 0, 0], sizes = [2, 8, 128], strides = [1, 1, 1]} : vector<32x8x128xf32> to vector<2x8x128xf32>
    %247 = arith.truncf %246 : vector<2x8x128xf32> to vector<2x8x128xbf16>
    %c0_107 = arith.constant 0 : index
    %c0_108 = arith.constant 0 : index
    %c1920 = arith.constant 1920 : index
    %248 = vector.load %arg3[%c0_107, %c0_108, %c1920] : memref<2x8x2048xbf16, #tpu.memory_space<vmem>>, vector<2x8x128xbf16>
    tpu.vector_store %arg3[%c0_107, %c0_108, %c1920], %247 {strides = array<i32>} : memref<2x8x2048xbf16, #tpu.memory_space<vmem>>, vector<2x8x128xbf16>,
    %c16_i32_109 = arith.constant 16 : i32
    %249 = arith.muli %arg0, %c16_i32_109 : i32
    %c15_i32 = arith.constant 15 : i32
    %250 = arith.addi %249, %c15_i32 : i32
    %c128_i32_110 = arith.constant 128 : i32
    %251 = arith.muli %250, %c128_i32_110 : i32
    %252 = vector.broadcast %251 : i32 to vector<1x1x128xi32>
    %253 = arith.addi %252, %4 : vector<1x1x128xi32>
    %c3000_i32_111 = arith.constant 3000 : i32
    %254 = vector.broadcast %c3000_i32_111 : i32 to vector<1x1x128xi32>
    %255 = arith.cmpi slt, %253, %254 : vector<1x1x128xi32>
    %cst_112 = arith.constant 0.000000e+00 : f32
    %256 = vector.shape_cast %255 : vector<1x1x128xi1> to vector<1x1x128xi1>
    %257 = vector.broadcast %256 : vector<1x1x128xi1> to vector<2x8x128xi1>
    %258 = vector.broadcast %cst_112 : f32 to vector<2x8x128xf32>
    %259 = arith.select %257, %246, %258 : vector<2x8x128xi1>, vector<2x8x128xf32>
    %cst_113 = arith.constant dense<0.000000e+00> : vector<2x8xf32>
    %260 = vector.multi_reduction <add>, %259, %cst_113 [2] : vector<2x8x128xf32> to vector<2x8xf32>
    %261 = arith.addf %245, %260 : vector<2x8xf32>
    %c0_114 = arith.constant 0 : index
    %c0_115 = arith.constant 0 : index
    %c0_116 = arith.constant 0 : index
    %262 = vector.load %arg4[%c0_114, %c0_115, %c0_116] : memref<1x2x8xf32, #tpu.memory_space<vmem>>, vector<1x2x8xf32>
    %263 = vector.shape_cast %262 : vector<1x2x8xf32> to vector<2x8xf32>
    %264 = vector.shape_cast %261 : vector<2x8xf32> to vector<1x2x8xf32>
    tpu.vector_store %arg4[%c0_114, %c0_115, %c0_116], %264 {strides = array<i32>} : memref<1x2x8xf32, #tpu.memory_space<vmem>>, vector<1x2x8xf32>,
    return
  }
  func.func @transform_0(%arg0: i32) -> (i32, i32) {
    %c0_i32 = arith.constant 0 : i32
    %c0_i32_0 = arith.constant 0 : i32
    return %arg0, %c0_i32 : i32, i32
  }
  func.func @transform_1(%arg0: i32) -> (i32, i32) {
    %c0_i32 = arith.constant 0 : i32
    %c0_i32_0 = arith.constant 0 : i32
    %c0_i32_1 = arith.constant 0 : i32
    return %c0_i32, %c0_i32_0 : i32, i32
  }
  func.func @transform_2(%arg0: i32) -> (i32, i32, i32) {
    %c0_i32 = arith.constant 0 : i32
    %c0_i32_0 = arith.constant 0 : i32
    %c0_i32_1 = arith.constant 0 : i32
    return %c0_i32, %c0_i32_0, %arg0 : i32, i32, i32
  }
  func.func @transform_3(%arg0: i32) -> (i32, i32, i32) {
    %c0_i32 = arith.constant 0 : i32
    %c0_i32_0 = arith.constant 0 : i32
    %c0_i32_1 = arith.constant 0 : i32
    return %arg0, %c0_i32, %c0_i32_0 : i32, i32, i32
  }
}

</mosaic_0001>

<bundles_post_ra>
// kernel: tpu_custom_call.1
= control target key start
LH: loop header
LB: loop body
LE: loop exit
PB: predicated region body
PF: predicated region fallthrough
CT: control target
= control target key end

     0   :  { %9 = vsyncpa [#allocation3], 0  ;;  %s4078_s0 = inlined_call_operand.hbm [shape: bf16[64,256], index: 0, kind: input, shape index: {}]   ;;  %s4079_s1 = inlined_call_operand.hbm [shape: bf16[256,1024], index: 1, kind: input, shape index: {}]   ;;  %s4080_s2 = inlined_call_operand.hbm [shape: bf16[2,8,4096], index: 2, kind: output, shape index: {0}]   ;;  %s4081_s3 = inlined_call_operand.hbm [shape: f32[2,2,8], index: 3, kind: output, shape index: {1}]  }
   0x1   :  { %11 = vsyncpa [#allocation3 + $0x1], 0 }
   0x2   :  { %12 = vsyncpa [#allocation6], 0 }
   0x3   :  { %13 = vsyncpa [#allocation4], 0 }
   0x4   :  { %15 = vsyncpa [#allocation4 + $0x1], 0 }
   0x5   :  { %16 = vsyncpa [#allocation9], 0 }
   0x6   :  { %18 = vsyncpa [#allocation9 + $0x1], 0  ;;  %s3243_s12 = smov 0   ;;  %s3245_s13 = smov 0  }
   0x7   :  { %s3247_s14 = smov 0   ;;  %s3249_s15 = smov 0  }
   0x8 LB: > { %s3264_s16 = sadd.s32 4294967295, %s3211_s15   ;;  %s2233_s17 = sadd.s32 4294967294, %s3211_s15   ;;  %s3211_s15 = sphi %s3249_s15, %s4094_s15   ;;  %s3207_s14 = sphi %s3247_s14, %s4093_s14   ;;  %s3203_s13 = sphi %s3245_s13, %s4092_s13   ;;  %s3199_s12 = sphi %s3243_s12, %s4091_s12  }
   0x9   : > { %p44_p0 = scmp.ne.s32.totalorder %s3203_s13, %s3199_s12  ;;  %p45_p1 = scmp.eq.s32.totalorder %s3264_s16, 0 }
   0xa   : > { %p89_p2 = scmp.eq.s32.totalorder %s3264_s16, 1  ;;  %p95_p3 = scmp.eq.s32.totalorder %s2233_s17, 1 }
   0xb   : > { %p3273_p4 = por %p45_p1, %p44_p0  ;;  %p2234_p5 = scmp.ge.s32.totalorder %s3211_s15, 1 }
   0xc   : > { %p3278_p6 = por %p95_p3, %p44_p0  ;;  %p128_p7 = scmp.lt.s32.totalorder %s3211_s15, 3 }
   0xd   : > { %s139_s22 = sshll.u32 %s4079_s1, 4  ;;  %s3213_s24 = smov [#allocation5]   ;;  %s140_s22 = int_to_ptr.hbm [resolvable:$true] %s139_s22 }
   0xe   : > { %p3286_p8 = pnand %p2234_p5, %p128_p7  ;;  %s141_s25 = sshll.u32 %s3213_s24, 4  ;;  %s142_s25 = int_to_ptr.vmem [resolvable:$true] %s141_s25 }
   0xf   : > { %s3296_s26 = sadd.s32 1, %s3211_s15   ;;  %s3214_s27 = smov 512  }
  0x10   : > { %p2988_p9 = pneg %p3286_p8  ;;  %s3215_s28 = smov 32  }
  0x11   : > { %s28_s29 = ssub.s32 %s3211_s15, %s3296_s26  ;;  %s31_s30 = sadd.s32 1, %s3207_s14 }
  0x12   : > { %p2989_p10 = pnand %p2988_p9, %p45_p1  ;;  %p29_p12 = scmp.eq.s32.totalorder %s28_s29, 0 }
  0x13   : > { %p38_p13 = scmp.ne.s32.totalorder %s3207_s14, %s3203_s13  ;;  %p39_p0 = scmp.eq.s32.totalorder %s3211_s15, 0 }
  0x14   : > { %2991 = dma.hbm_to_vmem [thread:$0]  (!%p2989_p10), %s140_s22, 16384, %s142_s25, [#allocation6], %s3214_s27, %s3214_s27, %s3215_s28  }
  0x15   : > { %p3004_p3 = scmp.lt.s32.totalorder %s3211_s15, 2  ;;  %p40_p5 = por %p39_p0, %p38_p13 }
  0x16   : > { %s3306_s4 = scalar_select %p29_p12, %s3207_s14, %s31_s30  }
  0x17   : > { %p3310_p7 = por %p89_p2, %p38_p13  ;;  %s155_s6 = sand.u32 1, %s3207_s14  }
  0x18   : > { %s2799_s7 = sshll.u32 %s3211_s15, 5  ;;  %s2237_s8 = sshll.u32 %s155_s6, 5 }
  0x19   : > { %s165_s11 = scalar_lea.hbm %s4078_s0, %s2799_s7  ;;  %s159_s20 = scalar_lea.vmem [#allocation2], %s2237_s8 }
  0x1a   : > { %s166_s17 = sshll.u32 %s165_s11, 4  ;;  %s168_s21 = sshll.u32 %s159_s20, 4  ;;  %s167_s17 = int_to_ptr.hbm [resolvable:$true] %s166_s17  ;;  %s169_s21 = int_to_ptr.vmem [resolvable:$true] %s168_s21 }
  0x1b   : > { %p3321_p9 = pnand %p3004_p3, %p40_p5  ;;  %s156_s24 = scalar_lea.sflag [#allocation3], %s155_s6 }
  0x1c   : > { %s3079_s25 = sshra.s32 %s167_s17, 4  ;;  %s3086_s30 = scalar_lea.hbm %s4078_s0, 64  ;;  %s3080_s25 = int_to_ptr.hbm [resolvable:$true] %s3079_s25 }
  0x1d   : > { %s3081_s27 = scalar_lea.hbm %s3080_s25, 32  ;;  %p3083_p10 = pneg %p3321_p9 }
  0x1e   : > { %p3082_p2 = scmp.ne.s32.totalorder %s3080_s25, %s3081_s27  ;;  %p3087_p0 = scmp.lt.s32.totalorder %s3080_s25, %s4078_s0 }
  0x1f   : > { %p3088_p3 = scmp.lt.s32.totalorder %s3086_s30, %s3081_s27 }
  0x20   : > { %p3084_p12 = pnand %p3083_p10, %p3082_p2 }
  0x21   : > { %p3089_p5 = por %p3088_p3, %p3087_p0 }
  0x22   : > { %p3085_p13 = pneg %p3084_p12 }
  0x24   : > { %p3090_p11 = pnand %p3089_p5, %p3085_p13 }
  0x26   : > { %3093 = shalt.err (!%p3090_p11)
}
  0x27   : > { %s3216_s6 = smov 128   ;;  %s3217_s9 = smov 8  }
  0x28   : > { %2995 = dma.hbm_to_vmem [thread:$0]  (!%p3321_p9), %s167_s17, 512, %s169_s21, %s156_s24, %s3216_s6, %s3216_s6, %s3217_s9  }
  0x29   : > { %180 = sbr.rel (%p3286_p8) target bundleno = 532 (0x214), region = 28  ;;  %s3338_s10 = sand.u32 (!%p3286_p8), 1, %s3203_s13  }
  0x2a   : > { %s2242_s11 = sshll.u32 (!%p3286_p8), %s3338_s10, 5  ;;  %s183_s20 = scalar_lea.sflag (!%p3286_p8), [#allocation3], %s3338_s10 }
  0x2b   : > { %s3342_s25 = scalar_lea.vmem (!%p3286_p8), [#allocation2], %s2242_s11 }
  0x2e   : > { %3182 = dma.done.wait (%p3273_p4), %s183_s20, 512  }
  0x2f   : > { %3184 = vsyncadd (%p3273_p4), %s183_s20, 4294966784 }
  0x30   : > { %3186 = dma.done.wait (%p45_p1), [#allocation6], 16384  }
  0x31   : > { %3188 = vsyncadd (%p45_p1), [#allocation6], 4294950912  ;;  %v2488_v0 = vld [vmem:[#allocation5 + $0x1c0] sm:$0xf]  ;;  %v2860_v5 = vld [vmem:[#allocation5 + $0x1c4] sm:$0xf] }
  0x32   : > { %v2864_v1 = vld [vmem:[#allocation5 + $0x1dc] sm:$0xf0]  ;;  %v2490_v6 = vld [vmem:[#allocation5 + $0x1e0] sm:$0xf0]  ;;  %vm1319_vm0 = vcmask 1047556   ;;  %s3517_s18 = sshll.u32 %s3264_s16, 11 }
  0x33   : > { %v2744_v2 = vld [vmem:[#allocation5 + $0x3c0] sm:$0xf]  ;;  %v2489_v3 = vor.u32 %v2864_v1, %v2488_v0  ;;  %v2493_v8 = vor.u32 %v2860_v5, %v2490_v6  ;;  %v2924_v9 = vld [vmem:[#allocation5 + $0x3c4] sm:$0xf]  ;;  %s2937_s23 = sadd.s32 384, %s3517_s18  ;;  %s2935_s17 = sadd.s32 256, %s3517_s18 }
  0x34   : > { %v2928_v4 = vld [vmem:[#allocation5 + $0x3dc] sm:$0xf0]  ;;  %v2746_v10 = vld [vmem:[#allocation5 + $0x3e0] sm:$0xf0]  ;;  %s2933_s21 = sadd.s32 128, %s3517_s18  ;;  %s2941_s22 = sadd.s32 640, %s3517_s18 }
  0x35   : > { %v2745_v7 = vor.u32 %v2928_v4, %v2744_v2  ;;  %v2456_v11 = vld [vmem:[#allocation5 + $0x180] sm:$0xf]  ;;  %1014 = vmatpush.bf16.msra.mxu0 %v2489_v3  ;;  %v2749_v12 = vor.u32 %v2924_v9, %v2746_v10  ;;  %1052 = vmatpush.bf16.msra.mxu2 %v2493_v8  ;;  %v2852_v18 = vld [vmem:[#allocation5 + $0x184] sm:$0xf]  ;;  %s2244_s24 = sshll.u32 %s3338_s10, 7  ;;  %s2943_s27 = sadd.s32 768, %s3517_s18 }
  0x36   : > { %v2856_v13 = vld [vmem:[#allocation5 + $0x19c] sm:$0xf0]  ;;  %v2458_v19 = vld [vmem:[#allocation5 + $0x1a0] sm:$0xf0]  ;;  %s2945_s28 = sadd.s32 896, %s3517_s18  ;;  %s3672_s29 = scalar_lea.vmem [#allocation7], %s2244_s24 }
  0x37   : > { %v2712_v14 = vld [vmem:[#allocation5 + $0x380] sm:$0xf]  ;;  %1033 = vmatpush.bf16.msra.mxu1 %v2745_v7  ;;  %v2457_v16 = vor.u32 %v2856_v13, %v2456_v11  ;;  %v2916_v20 = vld [vmem:[#allocation5 + $0x384] sm:$0xf]  ;;  %1071 = vmatpush.bf16.msra.mxu3 %v2749_v12  ;;  %v2461_v21 = vor.u32 %v2852_v18, %v2458_v19  ;;  %s2939_s30 = sadd.s32 512, %s3517_s18  ;;  %s2949_s7 = sadd.s32 1152, %s3517_s18 }
  0x38   : > { %v2920_v15 = vld [vmem:[#allocation5 + $0x39c] sm:$0xf0]  ;;  %v2714_v22 = vld [vmem:[#allocation5 + $0x3a0] sm:$0xf0]  ;;  %s2953_s8 = sadd.s32 1408, %s3517_s18  ;;  %s2947_s6 = sadd.s32 1024, %s3517_s18 }
  0x39   : > { %v2713_v17 = vor.u32 %v2920_v15, %v2712_v14  ;;  %v2424_v23 = vld [vmem:[#allocation5 + $0x140] sm:$0xf]  ;;  %v2717_v25 = vor.u32 %v2916_v20, %v2714_v22  ;;  %v2844_v28 = vld [vmem:[#allocation5 + $0x144] sm:$0xf]  ;;  %1015 = vmatpush.bf16.msra.mxu0 %v2457_v16  ;;  %1053 = vmatpush.bf16.msra.mxu2 %v2461_v21  ;;  %s2951_s9 = sadd.s32 1280, %s3517_s18  ;;  %s2955_s11 = sadd.s32 1536, %s3517_s18 }
  0x3a   : > { %v2848_v24 = vld [vmem:[#allocation5 + $0x15c] sm:$0xf0]  ;;  %v2426_v30 = vld [vmem:[#allocation5 + $0x160] sm:$0xf0]  ;;  %s2957_s20 = sadd.s32 1664, %s3517_s18  ;;  %s2100_s24 = sshll.u32 %s3672_s29, 4  ;;  %s2101_s24 = int_to_ptr.vmem [resolvable:$true] %s2100_s24 }
  0x3b   : > { %v2680_v26 = vld [vmem:[#allocation5 + $0x340] sm:$0xf]  ;;  %v2425_v29 = vor.u32 %v2848_v24, %v2424_v23  ;;  %v2908_v31 = vld [vmem:[#allocation5 + $0x344] sm:$0xf]  ;;  %1034 = vmatpush.bf16.msra.mxu1 %v2713_v17  ;;  %v2429_v34 = vor.u32 %v2844_v28, %v2426_v30  ;;  %1072 = vmatpush.bf16.msra.mxu3 %v2717_v25  ;;  %v2498_v30 = vld [vmem:[#allocation5 + $0x1e8] sm:$0xf0] }
  0x3c   : > { %v2912_v27 = vld [vmem:[#allocation5 + $0x35c] sm:$0xf0]  ;;  %v2682_v32 = vld [vmem:[#allocation5 + $0x360] sm:$0xf0] }
  0x3d   : > { %v2681_v33 = vor.u32 %v2912_v27, %v2680_v26  ;;  %v2392_v35 = vld [vmem:[#allocation5 + $0x100] sm:$0xf]  ;;  %v2685_v38 = vor.u32 %v2908_v31, %v2682_v32  ;;  %v2836_v40 = vld [vmem:[#allocation5 + $0x104] sm:$0xf]  ;;  %1016 = vmatpush.bf16.msra.mxu0 %v2425_v29  ;;  %1054 = vmatpush.bf16.msra.mxu2 %v2429_v34  ;;  %v2861_v29 = vld [vmem:[#allocation5 + $0x1cc] sm:$0xf] }
  0x3e   : > { %v2840_v36 = vld [vmem:[#allocation5 + $0x11c] sm:$0xf0]  ;;  %v2394_v41 = vld [vmem:[#allocation5 + $0x120] sm:$0xf0]  ;;  %v2801_v32 = vld [vmem:[%s3342_s25 + $0x4] sm:$0xf0] }
  0x3f   : > { %v2648_v37 = vld [vmem:[#allocation5 + $0x300] sm:$0xf]  ;;  %v2900_v42 = vld [vmem:[#allocation5 + $0x304] sm:$0xf]  ;;  %v2393_v44 = vor.u32 %v2840_v36, %v2392_v35  ;;  %1035 = vmatpush.bf16.msra.mxu1 %v2681_v33  ;;  %v2397_v46 = vor.u32 %v2836_v40, %v2394_v41  ;;  %1073 = vmatpush.bf16.msra.mxu3 %v2685_v38  ;;  %v2925_v33 = vld [vmem:[#allocation5 + $0x3cc] sm:$0xf]  ;;  %v2501_v40 = vor.u32 %v2861_v29, %v2498_v30 }
  0x40   : > { %v2904_v39 = vld [vmem:[#allocation5 + $0x31c] sm:$0xf0]  ;;  %v2650_v43 = vld [vmem:[#allocation5 + $0x320] sm:$0xf0]  ;;  %v2754_v34 = vld [vmem:[#allocation5 + $0x3e8] sm:$0xf0] }
  0x41   : > { %v2649_v45 = vor.u32 %v2904_v39, %v2648_v37  ;;  %v2360_v47 = vld [vmem:[#allocation5 + $0xc0] sm:$0xf]  ;;  %v2653_v50 = vor.u32 %v2900_v42, %v2650_v43  ;;  %v2828_v52 = vld [vmem:[#allocation5 + $0xc4] sm:$0xf]  ;;  %1017 = vmatpush.bf16.msra.mxu0 %v2393_v44  ;;  %1055 = vmatpush.bf16.msra.mxu2 %v2397_v46  ;;  %v2250_v38 = vld [vmem:[%s3342_s25 + $0x8] sm:$0xf0] }
  0x42   : > { %v2832_v48 = vld [vmem:[#allocation5 + $0xdc] sm:$0xf0]  ;;  %v2362_v53 = vld [vmem:[#allocation5 + $0xe0] sm:$0xf0]  ;;  %v2496_v41 = vld [vmem:[#allocation5 + $0x1c8] sm:$0xf] }
  0x43   : > { %v2616_v49 = vld [vmem:[#allocation5 + $0x2c0] sm:$0xf]  ;;  %v2892_v54 = vld [vmem:[#allocation5 + $0x2c4] sm:$0xf]  ;;  %v2361_v56 = vor.u32 %v2832_v48, %v2360_v47  ;;  %1036 = vmatpush.bf16.msra.mxu1 %v2649_v45  ;;  %v2365_v58 = vor.u32 %v2828_v52, %v2362_v53  ;;  %1074 = vmatpush.bf16.msra.mxu3 %v2653_v50  ;;  %v2865_v42 = vld [vmem:[#allocation5 + $0x1e4] sm:$0xf0]  ;;  %v2757_v45 = vor.u32 %v2925_v33, %v2754_v34 }
  0x44   : > { %v2896_v51 = vld [vmem:[#allocation5 + $0x2dc] sm:$0xf0]  ;;  %v2618_v55 = vld [vmem:[#allocation5 + $0x2e0] sm:$0xf0]  ;;  %v2752_v43 = vld [vmem:[#allocation5 + $0x3c8] sm:$0xf]  ;;  %v2497_v52 = vor.u32 %v2865_v42, %v2496_v41 }
  0x45   : > { %v2617_v57 = vor.u32 %v2896_v51, %v2616_v49  ;;  %v2328_v59 = vld [vmem:[#allocation5 + $0x80] sm:$0xf]  ;;  %v2621_v62 = vor.u32 %v2892_v54, %v2618_v55  ;;  %v2820_v0 = vld [vmem:[#allocation5 + $0x84] sm:$0xf]  ;;  %1018 = vmatpush.bf16.msra.mxu0 %v2361_v56  ;;  %1056 = vmatpush.bf16.msra.mxu2 %v2365_v58  ;;  %v2929_v46 = vld [vmem:[#allocation5 + $0x3e4] sm:$0xf0] }
  0x46   : > { %v2824_v60 = vld [vmem:[#allocation5 + $0x9c] sm:$0xf0]  ;;  %v2330_v1 = vld [vmem:[#allocation5 + $0xa0] sm:$0xf0]  ;;  %v2853_v47 = vld [vmem:[#allocation5 + $0x18c] sm:$0xf]  ;;  %v2753_v53 = vor.u32 %v2929_v46, %v2752_v43 }
  0x47   : > { %v2584_v61 = vld [vmem:[#allocation5 + $0x280] sm:$0xf]  ;;  %v2884_v2 = vld [vmem:[#allocation5 + $0x284] sm:$0xf]  ;;  %v2329_v4 = vor.u32 %v2824_v60, %v2328_v59  ;;  %1037 = vmatpush.bf16.msra.mxu1 %v2617_v57  ;;  %v2333_v6 = vor.u32 %v2820_v0, %v2330_v1  ;;  %1075 = vmatpush.bf16.msra.mxu3 %v2621_v62  ;;  %v2466_v48 = vld [vmem:[#allocation5 + $0x1a8] sm:$0xf0] }
  0x48   : > { %v2888_v63 = vld [vmem:[#allocation5 + $0x29c] sm:$0xf0]  ;;  %v2586_v3 = vld [vmem:[#allocation5 + $0x2a0] sm:$0xf0]  ;;  %v2917_v50 = vld [vmem:[#allocation5 + $0x38c] sm:$0xf]  ;;  %v2469_v54 = vor.u32 %v2853_v47, %v2466_v48 }
  0x49   : > { %v2585_v5 = vor.u32 %v2888_v63, %v2584_v61  ;;  %v2296_v7 = vld [vmem:[#allocation5 + $0x40] sm:$0xf]  ;;  %v2589_v10 = vor.u32 %v2884_v2, %v2586_v3  ;;  %v2812_v12 = vld [vmem:[#allocation5 + $0x44] sm:$0xf]  ;;  %1019 = vmatpush.bf16.msra.mxu0 %v2329_v4  ;;  %1057 = vmatpush.bf16.msra.mxu2 %v2333_v6  ;;  %v2722_v51 = vld [vmem:[#allocation5 + $0x3a8] sm:$0xf0] }
  0x4a   : > { %v2816_v8 = vld [vmem:[#allocation5 + $0x5c] sm:$0xf0]  ;;  %v2298_v13 = vld [vmem:[#allocation5 + $0x60] sm:$0xf0]  ;;  %v2464_v55 = vld [vmem:[#allocation5 + $0x188] sm:$0xf]  ;;  %v2725_v58 = vor.u32 %v2917_v50, %v2722_v51 }
  0x4b   : > { %v2552_v9 = vld [vmem:[#allocation5 + $0x240] sm:$0xf]  ;;  %v2876_v14 = vld [vmem:[#allocation5 + $0x244] sm:$0xf]  ;;  %v2297_v16 = vor.u32 %v2816_v8, %v2296_v7  ;;  %1038 = vmatpush.bf16.msra.mxu1 %v2585_v5  ;;  %v2301_v20 = vor.u32 %v2812_v12, %v2298_v13  ;;  %1076 = vmatpush.bf16.msra.mxu3 %v2589_v10  ;;  %v2857_v56 = vld [vmem:[#allocation5 + $0x1a4] sm:$0xf0] }
  0x4c   : > { %v2880_v11 = vld [vmem:[#allocation5 + $0x25c] sm:$0xf0]  ;;  %v2554_v15 = vld [vmem:[#allocation5 + $0x260] sm:$0xf0]  ;;  %v2720_v57 = vld [vmem:[#allocation5 + $0x388] sm:$0xf]  ;;  %v2465_v0 = vor.u32 %v2857_v56, %v2464_v55 }
  0x4d   : > { %v2264_v17 = vld [vmem:[#allocation5] sm:$0xf]  ;;  %v2553_v19 = vor.u32 %v2880_v11, %v2552_v9  ;;  %v2804_v23 = vld [vmem:[#allocation5 + $0x4] sm:$0xf]  ;;  %v2557_v24 = vor.u32 %v2876_v14, %v2554_v15  ;;  %1020 = vmatpush.bf16.msra.mxu0 %v2297_v16  ;;  %1058 = vmatpush.bf16.msra.mxu2 %v2301_v20  ;;  %v2921_v59 = vld [vmem:[#allocation5 + $0x3a4] sm:$0xf0] }
  0x4e   : > { %v2808_v18 = vld [vmem:[#allocation5 + $0x1c] sm:$0xf0]  ;;  %v2266_v25 = vld [vmem:[#allocation5 + $0x20] sm:$0xf0]  ;;  %v2845_v60 = vld [vmem:[#allocation5 + $0x14c] sm:$0xf]  ;;  %v2721_v1 = vor.u32 %v2921_v59, %v2720_v57 }
  0x4f   : > { %v2520_v21 = vld [vmem:[#allocation5 + $0x200] sm:$0xf]  ;;  %v2868_v26 = vld [vmem:[#allocation5 + $0x204] sm:$0xf]  ;;  %v2265_v31 = vor.u32 %v2808_v18, %v2264_v17  ;;  %1039 = vmatpush.bf16.msra.mxu1 %v2553_v19  ;;  %v2269_v36 = vor.u32 %v2804_v23, %v2266_v25  ;;  %1077 = vmatpush.bf16.msra.mxu3 %v2557_v24  ;;  %v2434_v61 = vld [vmem:[#allocation5 + $0x168] sm:$0xf0] }
  0x50   : > { %v2872_v22 = vld [vmem:[#allocation5 + $0x21c] sm:$0xf0]  ;;  %v2522_v27 = vld [vmem:[#allocation5 + $0x220] sm:$0xf0]  ;;  %v2909_v62 = vld [vmem:[#allocation5 + $0x34c] sm:$0xf]  ;;  %v2437_v2 = vor.u32 %v2845_v60, %v2434_v61 }
  0x51   : > { %v2248_v28 = vld [vmem:[%s3342_s25] sm:$0xf]  ;;  %v2521_v35 = vor.u32 %v2872_v22, %v2520_v21  ;;  %v2800_v37 = vld [vmem:[%s3342_s25 + $0x4] sm:$0xf]  ;;  %v2525_v39 = vor.u32 %v2868_v26, %v2522_v27  ;;  %1021 = vmatpush.bf16.msra.mxu0 %v2265_v31  ;;  %1059 = vmatpush.bf16.msra.mxu2 %v2269_v36  ;;  %v2690_v63 = vld [vmem:[#allocation5 + $0x368] sm:$0xf0] }
  0x52   : > { %v3356_v44 = vor.u32 %v2801_v32, %v2248_v28  ;;  %v3358_v49 = vor.u32 %v2800_v37, %v2250_v38  ;;  %v2432_v3 = vld [vmem:[#allocation5 + $0x148] sm:$0xf]  ;;  %v2693_v6 = vor.u32 %v2909_v62, %v2690_v63  ;;  %v2837_v8 = vld [vmem:[#allocation5 + $0x10c] sm:$0xf]  ;;  %v2256_v20 = vld [vmem:[%s3342_s25 + $0x10] sm:$0xf] }
  0x53   : > { %1040 = vmatpush.bf16.msra.mxu1 %v2521_v35  ;;  %1078 = vmatpush.bf16.msra.mxu3 %v2525_v39  ;;  %v2849_v4 = vld [vmem:[#allocation5 + $0x164] sm:$0xf0]  ;;  %v2402_v9 = vld [vmem:[#allocation5 + $0x128] sm:$0xf0]  ;;  %v2803_v23 = vld [vmem:[%s3342_s25 + $0x14] sm:$0xf0] }
  0x54   : > { %1022 = vmatmul.bf16.vlgmr.msra.gmra.mxu0 %v3356_v44  ;;  %1060 = vmatmul.bf16.vlgmr.msra.gmra.mxu2 %v3356_v44  ;;  %v2688_v5 = vld [vmem:[#allocation5 + $0x348] sm:$0xf]  ;;  %v2901_v10 = vld [vmem:[#allocation5 + $0x30c] sm:$0xf]  ;;  %v2433_v12 = vor.u32 %v2849_v4, %v2432_v3  ;;  %v2405_v15 = vor.u32 %v2837_v8, %v2402_v9  ;;  %v2802_v27 = vld [vmem:[%s3342_s25 + $0x14] sm:$0xf]  ;;  %v3368_v34 = vor.u32 %v2803_v23, %v2256_v20 }
  0x55   : > { %1128 = vmatpush.bf16.msrb.mxu2 %v2501_v40  ;;  %1090 = vmatpush.bf16.msrb.mxu0 %v2497_v52  ;;  %v2913_v7 = vld [vmem:[#allocation5 + $0x364] sm:$0xf0]  ;;  %v2658_v11 = vld [vmem:[#allocation5 + $0x328] sm:$0xf0]  ;;  %v2258_v28 = vld [vmem:[%s3342_s25 + $0x18] sm:$0xf0] }
  0x56   : > { %1041 = vmatmul.bf16.vlgmr.msra.gmra.mxu1 %v3358_v49  ;;  %1079 = vmatmul.bf16.vlgmr.msra.gmra.mxu3 %v3358_v49  ;;  %v2400_v13 = vld [vmem:[#allocation5 + $0x108] sm:$0xf]  ;;  %v2689_v14 = vor.u32 %v2913_v7, %v2688_v5  ;;  %v2661_v19 = vor.u32 %v2901_v10, %v2658_v11  ;;  %v2829_v21 = vld [vmem:[#allocation5 + $0xcc] sm:$0xf]  ;;  %v3370_v39 = vor.u32 %v2802_v27, %v2258_v28  ;;  %v2862_v4 = vld [vmem:[#allocation5 + $0x1d4] sm:$0xf] }
  0x57   : > { %1147 = vmatpush.bf16.msrb.mxu3 %v2757_v45  ;;  %1109 = vmatpush.bf16.msrb.mxu1 %v2753_v53  ;;  %v2841_v16 = vld [vmem:[#allocation5 + $0x124] sm:$0xf0]  ;;  %v2370_v22 = vld [vmem:[#allocation5 + $0xe8] sm:$0xf0]  ;;  %v2506_v5 = vld [vmem:[#allocation5 + $0x1f0] sm:$0xf0] }
  0x58   : > { %v2656_v17 = vld [vmem:[#allocation5 + $0x308] sm:$0xf]  ;;  %v2893_v24 = vld [vmem:[#allocation5 + $0x2cc] sm:$0xf]  ;;  %v2401_v26 = vor.u32 %v2841_v16, %v2400_v13  ;;  %v2373_v30 = vor.u32 %v2829_v21, %v2370_v22  ;;  %v2926_v8 = vld [vmem:[#allocation5 + $0x3d4] sm:$0xf]  ;;  %v2509_v16 = vor.u32 %v2862_v4, %v2506_v5 }
  0x59   : > { %1129 = vmatpush.bf16.msrb.mxu2 %v2469_v54  ;;  %1091 = vmatpush.bf16.msrb.mxu0 %v2465_v0  ;;  %v2905_v18 = vld [vmem:[#allocation5 + $0x324] sm:$0xf0]  ;;  %v2626_v25 = vld [vmem:[#allocation5 + $0x2e8] sm:$0xf0]  ;;  %v2762_v9 = vld [vmem:[#allocation5 + $0x3f0] sm:$0xf0] }
  0x5a   : > { %v2657_v29 = vor.u32 %v2905_v18, %v2656_v17  ;;  %v2368_v31 = vld [vmem:[#allocation5 + $0xc8] sm:$0xf]  ;;  %v2629_v35 = vor.u32 %v2893_v24, %v2626_v25  ;;  %v2821_v37 = vld [vmem:[#allocation5 + $0x8c] sm:$0xf]  ;;  %v2504_v17 = vld [vmem:[#allocation5 + $0x1d0] sm:$0xf]  ;;  %v2765_v20 = vor.u32 %v2926_v8, %v2762_v9 }
  0x5b   : > { %1148 = vmatpush.bf16.msrb.mxu3 %v2725_v58  ;;  %1110 = vmatpush.bf16.msrb.mxu1 %v2721_v1  ;;  %v2833_v32 = vld [vmem:[#allocation5 + $0xe4] sm:$0xf0]  ;;  %v2338_v38 = vld [vmem:[#allocation5 + $0xa8] sm:$0xf0]  ;;  %v2866_v18 = vld [vmem:[#allocation5 + $0x1ec] sm:$0xf0] }
  0x5c   : > { %v2624_v33 = vld [vmem:[#allocation5 + $0x2c8] sm:$0xf]  ;;  %v2885_v40 = vld [vmem:[#allocation5 + $0x28c] sm:$0xf]  ;;  %v2369_v42 = vor.u32 %v2833_v32, %v2368_v31  ;;  %v2341_v45 = vor.u32 %v2821_v37, %v2338_v38  ;;  %v2930_v21 = vld [vmem:[#allocation5 + $0x3ec] sm:$0xf0] }
  0x5d   : > { %1130 = vmatpush.bf16.msrb.mxu2 %v2437_v2  ;;  %1092 = vmatpush.bf16.msrb.mxu0 %v2433_v12  ;;  %v2897_v36 = vld [vmem:[#allocation5 + $0x2e4] sm:$0xf0]  ;;  %v2594_v41 = vld [vmem:[#allocation5 + $0x2a8] sm:$0xf0]  ;;  %v2854_v22 = vld [vmem:[#allocation5 + $0x194] sm:$0xf] }
  0x5e   : > { %v2625_v43 = vor.u32 %v2897_v36, %v2624_v33  ;;  %v2336_v46 = vld [vmem:[#allocation5 + $0x88] sm:$0xf]  ;;  %v2597_v50 = vor.u32 %v2885_v40, %v2594_v41  ;;  %v2813_v52 = vld [vmem:[#allocation5 + $0x4c] sm:$0xf]  ;;  %v2474_v23 = vld [vmem:[#allocation5 + $0x1b0] sm:$0xf0] }
  0x5f   : > { %1149 = vmatpush.bf16.msrb.mxu3 %v2693_v6  ;;  %1111 = vmatpush.bf16.msrb.mxu1 %v2689_v14  ;;  %v2825_v47 = vld [vmem:[#allocation5 + $0xa4] sm:$0xf0]  ;;  %v2306_v53 = vld [vmem:[#allocation5 + $0x68] sm:$0xf0]  ;;  %v2918_v27 = vld [vmem:[#allocation5 + $0x394] sm:$0xf] }
  0x60   : > { %v2592_v48 = vld [vmem:[#allocation5 + $0x288] sm:$0xf]  ;;  %v2877_v54 = vld [vmem:[#allocation5 + $0x24c] sm:$0xf]  ;;  %v2337_v56 = vor.u32 %v2825_v47, %v2336_v46  ;;  %v2309_v59 = vor.u32 %v2813_v52, %v2306_v53  ;;  %v2730_v28 = vld [vmem:[#allocation5 + $0x3b0] sm:$0xf0] }
  0x61   : > { %1131 = vmatpush.bf16.msrb.mxu2 %v2405_v15  ;;  %1093 = vmatpush.bf16.msrb.mxu0 %v2401_v26  ;;  %v2889_v51 = vld [vmem:[#allocation5 + $0x2a4] sm:$0xf0]  ;;  %v2562_v55 = vld [vmem:[#allocation5 + $0x268] sm:$0xf0]  ;;  %v2505_v26 = vor.u32 %v2866_v18, %v2504_v17  ;;  %v2472_v31 = vld [vmem:[#allocation5 + $0x190] sm:$0xf]  ;;  %v2733_v38 = vor.u32 %v2918_v27, %v2730_v28 }
  0x62   : > { %v2304_v57 = vld [vmem:[#allocation5 + $0x48] sm:$0xf]  ;;  %v2593_v58 = vor.u32 %v2889_v51, %v2592_v48  ;;  %v2565_v63 = vor.u32 %v2877_v54, %v2562_v55  ;;  %v2805_v0 = vld [vmem:[#allocation5 + $0xc] sm:$0xf]  ;;  %v2858_v32 = vld [vmem:[#allocation5 + $0x1ac] sm:$0xf0] }
  0x63   : > { %1150 = vmatpush.bf16.msrb.mxu3 %v2661_v19  ;;  %1112 = vmatpush.bf16.msrb.mxu1 %v2657_v29  ;;  %v2817_v60 = vld [vmem:[#allocation5 + $0x64] sm:$0xf0]  ;;  %v2274_v1 = vld [vmem:[#allocation5 + $0x28] sm:$0xf0]  ;;  %v2760_v19 = vld [vmem:[#allocation5 + $0x3d0] sm:$0xf]  ;;  %v2473_v40 = vor.u32 %v2858_v32, %v2472_v31 }
  0x64   : > { %1027 = vmatmul.bf16.gmra.mxu0 %v3368_v34  ;;  %1065 = vmatmul.bf16.gmra.mxu2 %v3368_v34  ;;  %v2560_v61 = vld [vmem:[#allocation5 + $0x248] sm:$0xf]  ;;  %v2869_v2 = vld [vmem:[#allocation5 + $0x20c] sm:$0xf]  ;;  %v2305_v6 = vor.u32 %v2817_v60, %v2304_v57  ;;  %v2277_v11 = vor.u32 %v2805_v0, %v2274_v1  ;;  %v2761_v29 = vor.u32 %v2930_v21, %v2760_v19  ;;  %v2728_v33 = vld [vmem:[#allocation5 + $0x390] sm:$0xf] }
  0x65   : > { %1132 = vmatpush.bf16.msrb.mxu2 %v2373_v30  ;;  %1094 = vmatpush.bf16.msrb.mxu0 %v2369_v42  ;;  %v2881_v62 = vld [vmem:[#allocation5 + $0x264] sm:$0xf0]  ;;  %v2530_v3 = vld [vmem:[#allocation5 + $0x228] sm:$0xf0]  ;;  %v2477_v30 = vor.u32 %v2854_v22, %v2474_v23  ;;  %v2846_v36 = vld [vmem:[#allocation5 + $0x154] sm:$0xf] }
  0x66   : > { %1046 = vmatmul.bf16.gmra.mxu1 %v3370_v39  ;;  %1084 = vmatmul.bf16.gmra.mxu3 %v3370_v39  ;;  %v2272_v7 = vld [vmem:[#allocation5 + $0x8] sm:$0xf]  ;;  %v2561_v10 = vor.u32 %v2881_v62, %v2560_v61  ;;  %v2533_v15 = vor.u32 %v2869_v2, %v2530_v3  ;;  %v2442_v37 = vld [vmem:[#allocation5 + $0x170] sm:$0xf0]  ;;  %v2440_v46 = vld [vmem:[#allocation5 + $0x150] sm:$0xf] }
  0x67   : > { %1151 = vmatpush.bf16.msrb.mxu3 %v2629_v35  ;;  %1113 = vmatpush.bf16.msrb.mxu1 %v2625_v43  ;;  %v2809_v12 = vld [vmem:[#allocation5 + $0x24] sm:$0xf0]  ;;  %v2922_v35 = vld [vmem:[#allocation5 + $0x3ac] sm:$0xf0]  ;;  %v2910_v41 = vld [vmem:[#allocation5 + $0x354] sm:$0xf] }
  0x68   : > { %v2528_v13 = vld [vmem:[#allocation5 + $0x208] sm:$0xf]  ;;  %v2273_v24 = vor.u32 %v2809_v12, %v2272_v7  ;;  %v2698_v42 = vld [vmem:[#allocation5 + $0x370] sm:$0xf0]  ;;  %v2729_v43 = vor.u32 %v2922_v35, %v2728_v33  ;;  %v2850_v47 = vld [vmem:[#allocation5 + $0x16c] sm:$0xf0] }
  0x69   : > { %1133 = vmatpush.bf16.msrb.mxu2 %v2341_v45  ;;  %1095 = vmatpush.bf16.msrb.mxu0 %v2337_v56  ;;  %v2873_v14 = vld [vmem:[#allocation5 + $0x224] sm:$0xf0]  ;;  %v2445_v45 = vor.u32 %v2846_v36, %v2442_v37  ;;  %v2696_v48 = vld [vmem:[#allocation5 + $0x350] sm:$0xf]  ;;  %v2838_v51 = vld [vmem:[#allocation5 + $0x114] sm:$0xf]  ;;  %v2701_v53 = vor.u32 %v2910_v41, %v2698_v42  ;;  %v2441_v54 = vor.u32 %v2850_v47, %v2440_v46 }
  0x6a   : > { %v2529_v25 = vor.u32 %v2873_v14, %v2528_v13  ;;  %v2410_v52 = vld [vmem:[#allocation5 + $0x130] sm:$0xf0]  ;;  %v2842_v60 = vld [vmem:[#allocation5 + $0x12c] sm:$0xf0]  ;;  %s2959_s25 = sadd.s32 1792, %s3517_s18 }
  0x6b   : > { %1152 = vmatpush.bf16.msrb.mxu3 %v2597_v50  ;;  %1114 = vmatpush.bf16.msrb.mxu1 %v2593_v58  ;;  %v2914_v50 = vld [vmem:[#allocation5 + $0x36c] sm:$0xf0]  ;;  %v2902_v55 = vld [vmem:[#allocation5 + $0x314] sm:$0xf]  ;;  %v2413_v58 = vor.u32 %v2838_v51, %v2410_v52 }
  0x6c   : > { %v2666_v56 = vld [vmem:[#allocation5 + $0x330] sm:$0xf0]  ;;  %v2697_v57 = vor.u32 %v2914_v50, %v2696_v48  ;;  %v2664_v61 = vld [vmem:[#allocation5 + $0x310] sm:$0xf] }
  0x6d   : > { %1134 = vmatpush.bf16.msrb.mxu2 %v2309_v59  ;;  %1096 = vmatpush.bf16.msrb.mxu0 %v2305_v6  ;;  %v2408_v59 = vld [vmem:[#allocation5 + $0x110] sm:$0xf]  ;;  %v2378_v0 = vld [vmem:[#allocation5 + $0xf0] sm:$0xf0]  ;;  %v2669_v1 = vor.u32 %v2902_v55, %v2666_v56  ;;  %v2770_v55 = vld [vmem:[#allocation5 + $0x3f8] sm:$0xf0] }
  0x6e   : > { %v2906_v62 = vld [vmem:[#allocation5 + $0x32c] sm:$0xf0]  ;;  %v2409_v2 = vor.u32 %v2842_v60, %v2408_v59  ;;  %v2894_v3 = vld [vmem:[#allocation5 + $0x2d4] sm:$0xf]  ;;  %v2512_v56 = vld [vmem:[#allocation5 + $0x1d8] sm:$0xf] }
  0x6f   : > { %1153 = vmatpush.bf16.msrb.mxu3 %v2565_v63  ;;  %1115 = vmatpush.bf16.msrb.mxu1 %v2561_v10  ;;  %v2830_v63 = vld [vmem:[#allocation5 + $0xd4] sm:$0xf]  ;;  %v2665_v5 = vor.u32 %v2906_v62, %v2664_v61  ;;  %v2376_v7 = vld [vmem:[#allocation5 + $0xd0] sm:$0xf]  ;;  %v2931_v59 = vld [vmem:[#allocation5 + $0x3f4] sm:$0xf0] }
  0x70   : > { %v2634_v4 = vld [vmem:[#allocation5 + $0x2f0] sm:$0xf0]  ;;  %v2381_v6 = vor.u32 %v2830_v63, %v2378_v0  ;;  %v2834_v8 = vld [vmem:[#allocation5 + $0xec] sm:$0xf0]  ;;  %v2855_v62 = vld [vmem:[#allocation5 + $0x19c] sm:$0xf] }
  0x71   : > { %1135 = vmatpush.bf16.msrb.mxu2 %v2277_v11  ;;  %1097 = vmatpush.bf16.msrb.mxu0 %v2273_v24  ;;  %v2632_v9 = vld [vmem:[#allocation5 + $0x2d0] sm:$0xf]  ;;  %v2822_v11 = vld [vmem:[#allocation5 + $0x94] sm:$0xf]  ;;  %v2637_v13 = vor.u32 %v2894_v3, %v2634_v4  ;;  %v2377_v14 = vor.u32 %v2834_v8, %v2376_v7  ;;  %v2482_v63 = vld [vmem:[#allocation5 + $0x1b8] sm:$0xf0] }
  0x72   : > { %v2898_v10 = vld [vmem:[#allocation5 + $0x2ec] sm:$0xf0]  ;;  %v2346_v12 = vld [vmem:[#allocation5 + $0xb0] sm:$0xf0]  ;;  %v2919_v4 = vld [vmem:[#allocation5 + $0x39c] sm:$0xf] }
  0x73   : > { %1154 = vmatpush.bf16.msrb.mxu3 %v2533_v15  ;;  %1116 = vmatpush.bf16.msrb.mxu1 %v2529_v25  ;;  %v2886_v15 = vld [vmem:[#allocation5 + $0x294] sm:$0xf]  ;;  %v2633_v17 = vor.u32 %v2898_v10, %v2632_v9  ;;  %v2349_v18 = vor.u32 %v2822_v11, %v2346_v12  ;;  %v2344_v19 = vld [vmem:[#allocation5 + $0x90] sm:$0xf]  ;;  %v2480_v7 = vld [vmem:[#allocation5 + $0x198] sm:$0xf] }
  0x74   : > { %1098 = vmatmul.bf16.vlgmr.msrb.gmra.mxu0 %v3356_v44  ;;  %1136 = vmatmul.bf16.vlgmr.msrb.gmra.mxu2 %v3356_v44  ;;  %v2600_v21 = vld [vmem:[#allocation5 + $0x290] sm:$0xf]  ;;  %v2814_v23 = vld [vmem:[#allocation5 + $0x54] sm:$0xf]  ;;  %v2859_v8 = vld [vmem:[#allocation5 + $0x1b4] sm:$0xf0] }
  0x75   : > { %1204 = vmatpush.bf16.msra.mxu2 %v2509_v16  ;;  %1166 = vmatpush.bf16.msra.mxu0 %v2505_v26  ;;  %v2602_v16 = vld [vmem:[#allocation5 + $0x2b0] sm:$0xf0]  ;;  %v2890_v22 = vld [vmem:[#allocation5 + $0x2ac] sm:$0xf0]  ;;  %v2736_v10 = vld [vmem:[#allocation5 + $0x398] sm:$0xf] }
  0x76   : > { %1117 = vmatmul.bf16.vlgmr.msrb.gmra.mxu1 %v3358_v49  ;;  %1155 = vmatmul.bf16.vlgmr.msrb.gmra.mxu3 %v3358_v49  ;;  %v2314_v24 = vld [vmem:[#allocation5 + $0x70] sm:$0xf0]  ;;  %v2605_v25 = vor.u32 %v2886_v15, %v2602_v16  ;;  %v2312_v31 = vld [vmem:[#allocation5 + $0x50] sm:$0xf]  ;;  %v2923_v11 = vld [vmem:[#allocation5 + $0x3b4] sm:$0xf0]  ;;  %v2481_v16 = vor.u32 %v2859_v8, %v2480_v7 }
  0x77   : > { %1223 = vmatpush.bf16.msra.mxu3 %v2765_v20  ;;  %1185 = vmatpush.bf16.msra.mxu1 %v2761_v29  ;;  %v2826_v20 = vld [vmem:[#allocation5 + $0xac] sm:$0xf0]  ;;  %v2878_v27 = vld [vmem:[#allocation5 + $0x254] sm:$0xf]  ;;  %v2601_v29 = vor.u32 %v2890_v22, %v2600_v21  ;;  %v2847_v12 = vld [vmem:[#allocation5 + $0x15c] sm:$0xf] }
  0x78   : > { %v2345_v26 = vor.u32 %v2826_v20, %v2344_v19  ;;  %v2570_v28 = vld [vmem:[#allocation5 + $0x270] sm:$0xf0]  ;;  %v2818_v32 = vld [vmem:[#allocation5 + $0x6c] sm:$0xf0]  ;;  %v2706_v15 = vld [vmem:[#allocation5 + $0x378] sm:$0xf0] }
  0x79   : > { %1205 = vmatpush.bf16.msra.mxu2 %v2477_v30  ;;  %1167 = vmatpush.bf16.msra.mxu0 %v2473_v40  ;;  %v2317_v30 = vor.u32 %v2814_v23, %v2314_v24  ;;  %v2568_v33 = vld [vmem:[#allocation5 + $0x250] sm:$0xf]  ;;  %v2806_v36 = vld [vmem:[#allocation5 + $0x14] sm:$0xf]  ;;  %v2514_v40 = vld [vmem:[#allocation5 + $0x1f8] sm:$0xf0]  ;;  %v2573_v41 = vor.u32 %v2878_v27, %v2570_v28  ;;  %v2313_v42 = vor.u32 %v2818_v32, %v2312_v31 }
  0x7a   : > { %v2882_v35 = vld [vmem:[#allocation5 + $0x26c] sm:$0xf0]  ;;  %v2282_v37 = vld [vmem:[#allocation5 + $0x30] sm:$0xf0]  ;;  %v2851_v19 = vld [vmem:[#allocation5 + $0x174] sm:$0xf0] }
  0x7b   : > { %1224 = vmatpush.bf16.msra.mxu3 %v2733_v38  ;;  %1186 = vmatpush.bf16.msra.mxu1 %v2729_v43  ;;  %v2863_v38 = vld [vmem:[#allocation5 + $0x1dc] sm:$0xf]  ;;  %v2870_v43 = vld [vmem:[#allocation5 + $0x214] sm:$0xf]  ;;  %v2280_v46 = vld [vmem:[#allocation5 + $0x10] sm:$0xf]  ;;  %v2569_v47 = vor.u32 %v2882_v35, %v2568_v33  ;;  %v2285_v48 = vor.u32 %v2806_v36, %v2282_v37 }
  0x7c   : > { %v2810_v50 = vld [vmem:[#allocation5 + $0x2c] sm:$0xf0]  ;;  %v2704_v22 = vld [vmem:[#allocation5 + $0x358] sm:$0xf]  ;;  %v2839_v24 = vld [vmem:[#allocation5 + $0x11c] sm:$0xf] }
  0x7d   : > { %1206 = vmatpush.bf16.msra.mxu2 %v2445_v45  ;;  %1168 = vmatpush.bf16.msra.mxu0 %v2441_v54  ;;  %v2538_v45 = vld [vmem:[#allocation5 + $0x230] sm:$0xf0]  ;;  %v2536_v51 = vld [vmem:[#allocation5 + $0x210] sm:$0xf]  ;;  %v2927_v54 = vld [vmem:[#allocation5 + $0x3dc] sm:$0xf]  ;;  %v2281_v61 = vor.u32 %v2810_v50, %v2280_v46 }
  0x7e   : > { %v2874_v52 = vld [vmem:[#allocation5 + $0x22c] sm:$0xf0]  ;;  %v2541_v60 = vor.u32 %v2870_v43, %v2538_v45  ;;  %v2915_v23 = vld [vmem:[#allocation5 + $0x374] sm:$0xf0]  ;;  %v2674_v27 = vld [vmem:[#allocation5 + $0x338] sm:$0xf0] }
  0x7f   : > { %1225 = vmatpush.bf16.msra.mxu3 %v2701_v53  ;;  %1187 = vmatpush.bf16.msra.mxu1 %v2697_v57  ;;  %v2517_v53 = vor.u32 %v2863_v38, %v2514_v40  ;;  %v2867_v57 = vld [vmem:[#allocation5 + $0x1f4] sm:$0xf0]  ;;  %v2537_v0 = vor.u32 %v2874_v52, %v2536_v51  ;;  %v2831_v37 = vld [vmem:[#allocation5 + $0xdc] sm:$0xf] }
  0x80   : > { %v2843_v31 = vld [vmem:[#allocation5 + $0x134] sm:$0xf0]  ;;  %v2386_v38 = vld [vmem:[#allocation5 + $0xf8] sm:$0xf0] }
  0x81   : > { %1207 = vmatpush.bf16.msra.mxu2 %v2413_v58  ;;  %1169 = vmatpush.bf16.msra.mxu0 %v2409_v2  ;;  %v2768_v58 = vld [vmem:[#allocation5 + $0x3d8] sm:$0xf]  ;;  %v2513_v2 = vor.u32 %v2867_v57, %v2512_v56  ;;  %v2895_v40 = vld [vmem:[#allocation5 + $0x2dc] sm:$0xf] }
  0x82   : > { %v2769_v3 = vor.u32 %v2931_v59, %v2768_v58  ;;  %v2672_v35 = vld [vmem:[#allocation5 + $0x318] sm:$0xf]  ;;  %v2823_v52 = vld [vmem:[#allocation5 + $0x9c] sm:$0xf] }
  0x83   : > { %1226 = vmatpush.bf16.msra.mxu3 %v2669_v1  ;;  %1188 = vmatpush.bf16.msra.mxu1 %v2665_v5  ;;  %v2773_v1 = vor.u32 %v2927_v54, %v2770_v55  ;;  %v2738_v5 = vld [vmem:[#allocation5 + $0x3b8] sm:$0xf0]  ;;  %v2907_v36 = vld [vmem:[#allocation5 + $0x334] sm:$0xf0] }
  0x84   : > { %1103 = vmatmul.bf16.gmra.mxu0 %v3368_v34  ;;  %1141 = vmatmul.bf16.gmra.mxu2 %v3368_v34  ;;  %v2741_v9 = vor.u32 %v2919_v4, %v2738_v5  ;;  %v2673_v43 = vor.u32 %v2907_v36, %v2672_v35  ;;  %v2384_v45 = vld [vmem:[#allocation5 + $0xd8] sm:$0xf]  ;;  %v2887_v54 = vld [vmem:[#allocation5 + $0x29c] sm:$0xf] }
  0x85   : > { %1208 = vmatpush.bf16.msra.mxu2 %v2381_v6  ;;  %1170 = vmatpush.bf16.msra.mxu0 %v2377_v14  ;;  %v2485_v6 = vor.u32 %v2855_v62, %v2482_v63  ;;  %v2911_v14 = vld [vmem:[#allocation5 + $0x35c] sm:$0xf]  ;;  %v2835_v46 = vld [vmem:[#allocation5 + $0xf4] sm:$0xf0] }
  0x86   : > { %1122 = vmatmul.bf16.gmra.mxu1 %v3370_v39  ;;  %1160 = vmatmul.bf16.gmra.mxu3 %v3370_v39  ;;  %v2709_v21 = vor.u32 %v2911_v14, %v2706_v15  ;;  %v2640_v50 = vld [vmem:[#allocation5 + $0x2d8] sm:$0xf]  ;;  %v2610_v55 = vld [vmem:[#allocation5 + $0x2b8] sm:$0xf0]  ;;  %v2385_v56 = vor.u32 %v2835_v46, %v2384_v45 }
  0x87   : > { %1227 = vmatpush.bf16.msra.mxu3 %v2637_v13  ;;  %1189 = vmatpush.bf16.msra.mxu1 %v2633_v17  ;;  %v2450_v13 = vld [vmem:[#allocation5 + $0x178] sm:$0xf0]  ;;  %v2737_v17 = vor.u32 %v2923_v11, %v2736_v10  ;;  %v2899_v51 = vld [vmem:[#allocation5 + $0x2f4] sm:$0xf0] }
  0x88   : > { %v2453_v20 = vor.u32 %v2847_v12, %v2450_v13  ;;  %v2641_v57 = vor.u32 %v2899_v51, %v2640_v50  ;;  %v2352_v58 = vld [vmem:[#allocation5 + $0x98] sm:$0xf]  ;;  %v2807_v12 = vld [vmem:[#allocation5 + $0x1c] sm:$0xf] }
  0x89   : > { %1209 = vmatpush.bf16.msra.mxu2 %v2349_v18  ;;  %1171 = vmatpush.bf16.msra.mxu0 %v2345_v26  ;;  %v2448_v18 = vld [vmem:[#allocation5 + $0x158] sm:$0xf]  ;;  %v2903_v26 = vld [vmem:[#allocation5 + $0x31c] sm:$0xf] }
  0x8a   : > { %v2449_v28 = vor.u32 %v2851_v19, %v2448_v18  ;;  %v2677_v33 = vor.u32 %v2903_v26, %v2674_v27  ;;  %v2827_v59 = vld [vmem:[#allocation5 + $0xb4] sm:$0xf0]  ;;  %v2290_v13 = vld [vmem:[#allocation5 + $0x38] sm:$0xf0] }
  0x8b   : > { %1228 = vmatpush.bf16.msra.mxu3 %v2605_v25  ;;  %1190 = vmatpush.bf16.msra.mxu1 %v2601_v29  ;;  %v2418_v25 = vld [vmem:[#allocation5 + $0x138] sm:$0xf0]  ;;  %v2705_v29 = vor.u32 %v2915_v23, %v2704_v22  ;;  %v2608_v62 = vld [vmem:[#allocation5 + $0x298] sm:$0xf]  ;;  %v2353_v4 = vor.u32 %v2827_v59, %v2352_v58  ;;  %v2293_v19 = vor.u32 %v2807_v12, %v2290_v13 }
  0x8c   : > { %v2421_v32 = vor.u32 %v2839_v24, %v2418_v25  ;;  %v2891_v63 = vld [vmem:[#allocation5 + $0x2b4] sm:$0xf0]  ;;  %v2871_v14 = vld [vmem:[#allocation5 + $0x21c] sm:$0xf] }
  0x8d   : > { %1210 = vmatpush.bf16.msra.mxu2 %v2317_v30  ;;  %1172 = vmatpush.bf16.msra.mxu0 %v2313_v42  ;;  %v2416_v30 = vld [vmem:[#allocation5 + $0x118] sm:$0xf]  ;;  %v2609_v5 = vor.u32 %v2891_v63, %v2608_v62  ;;  %v2546_v15 = vld [vmem:[#allocation5 + $0x238] sm:$0xf0] }
  0x8e   : > { %v2417_v42 = vor.u32 %v2843_v31, %v2416_v30  ;;  %v2819_v7 = vld [vmem:[#allocation5 + $0x74] sm:$0xf0] }
  0x8f   : > { %1229 = vmatpush.bf16.msra.mxu3 %v2573_v41  ;;  %1191 = vmatpush.bf16.msra.mxu1 %v2569_v47  ;;  %v2642_v41 = vld [vmem:[#allocation5 + $0x2f8] sm:$0xf0]  ;;  %v2389_v47 = vor.u32 %v2831_v37, %v2386_v38  ;;  %v2576_v10 = vld [vmem:[#allocation5 + $0x258] sm:$0xf] }
  0x90   : > { %v2883_v11 = vld [vmem:[#allocation5 + $0x274] sm:$0xf0] }
  0x91   : > { %1211 = vmatpush.bf16.msra.mxu2 %v2285_v48  ;;  %1173 = vmatpush.bf16.msra.mxu0 %v2281_v61  ;;  %v2645_v48 = vor.u32 %v2895_v40, %v2642_v41  ;;  %v2613_v61 = vor.u32 %v2887_v54, %v2610_v55  ;;  %v2288_v18 = vld [vmem:[#allocation5 + $0x18] sm:$0xf] }
  0x92   : > { %v2544_v22 = vld [vmem:[#allocation5 + $0x218] sm:$0xf] }
  0x93   : > { %1230 = vmatpush.bf16.msra.mxu3 %v2541_v60  ;;  %1192 = vmatpush.bf16.msra.mxu1 %v2537_v0  ;;  %v2815_v0 = vld [vmem:[#allocation5 + $0x5c] sm:$0xf]  ;;  %v2875_v23 = vld [vmem:[#allocation5 + $0x234] sm:$0xf0] }
  0x94   : > { %1174 = vmatmul.bf16.vlgmr.msra.gmra.mxu0 %v3356_v44  ;;  %1212 = vmatmul.bf16.vlgmr.msra.gmra.mxu2 %v3356_v44  ;;  %v2545_v25 = vor.u32 %v2875_v23, %v2544_v22 }
  0x95   : > { %1280 = vmatpush.bf16.msrb.mxu2 %v2517_v53  ;;  %1242 = vmatpush.bf16.msrb.mxu0 %v2513_v2  ;;  %v2354_v53 = vld [vmem:[#allocation5 + $0xb8] sm:$0xf0] }
  0x96   : > { %1193 = vmatmul.bf16.vlgmr.msra.gmra.mxu1 %v3358_v49  ;;  %1231 = vmatmul.bf16.vlgmr.msra.gmra.mxu3 %v3358_v49  ;;  %v2357_v60 = vor.u32 %v2823_v52, %v2354_v53  ;;  %v2879_v2 = vld [vmem:[#allocation5 + $0x25c] sm:$0xf] }
  0x97   : > { %1299 = vmatpush.bf16.msrb.mxu3 %v2773_v1  ;;  %1261 = vmatpush.bf16.msrb.mxu1 %v2769_v3  ;;  %v2322_v1 = vld [vmem:[#allocation5 + $0x78] sm:$0xf0] }
  0x98   : > { %v2578_v3 = vld [vmem:[#allocation5 + $0x278] sm:$0xf0]  ;;  %v2325_v8 = vor.u32 %v2815_v0, %v2322_v1 }
  0x99   : > { %1281 = vmatpush.bf16.msrb.mxu2 %v2485_v6  ;;  %1243 = vmatpush.bf16.msrb.mxu0 %v2481_v16  ;;  %v2320_v6 = vld [vmem:[#allocation5 + $0x58] sm:$0xf] }
  0x9a   : > { %v2321_v16 = vor.u32 %v2819_v7, %v2320_v6 }
  0x9b   : > { %1300 = vmatpush.bf16.msrb.mxu3 %v2741_v9  ;;  %1262 = vmatpush.bf16.msrb.mxu1 %v2737_v17  ;;  %v2581_v9 = vor.u32 %v2879_v2, %v2578_v3  ;;  %v2577_v17 = vor.u32 %v2883_v11, %v2576_v10 }
  0x9d   : > { %1282 = vmatpush.bf16.msrb.mxu2 %v2453_v20  ;;  %1244 = vmatpush.bf16.msrb.mxu0 %v2449_v28  ;;  %v2549_v20 = vor.u32 %v2871_v14, %v2546_v15 }
  0x9f   : > { %1301 = vmatpush.bf16.msrb.mxu3 %v2709_v21  ;;  %1263 = vmatpush.bf16.msrb.mxu1 %v2705_v29  ;;  %v2811_v21 = vld [vmem:[#allocation5 + $0x34] sm:$0xf0] }
  0xa0   : > { %v2289_v24 = vor.u32 %v2811_v21, %v2288_v18 }
  0xa1   : > { %1283 = vmatpush.bf16.msrb.mxu2 %v2421_v32  ;;  %1245 = vmatpush.bf16.msrb.mxu0 %v2417_v42 }
  0xa3   : > { %1302 = vmatpush.bf16.msrb.mxu3 %v2677_v33  ;;  %1264 = vmatpush.bf16.msrb.mxu1 %v2673_v43 }
  0xa4   : > { %1179 = vmatmul.bf16.gmra.mxu0 %v3368_v34  ;;  %1217 = vmatmul.bf16.gmra.mxu2 %v3368_v34 }
  0xa5   : > { %1284 = vmatpush.bf16.msrb.mxu2 %v2389_v47  ;;  %1246 = vmatpush.bf16.msrb.mxu0 %v2385_v56 }
  0xa6   : > { %1198 = vmatmul.bf16.gmra.mxu1 %v3370_v39  ;;  %1236 = vmatmul.bf16.gmra.mxu3 %v3370_v39 }
  0xa7   : > { %1303 = vmatpush.bf16.msrb.mxu3 %v2645_v48  ;;  %1265 = vmatpush.bf16.msrb.mxu1 %v2641_v57  ;;  %v3218_v48 = vmov 1983009808  }
  0xa8   : > { %v1324_v50 = vunpack.c.l.s4 %v3218_v48 }
  0xa9   : > { %1285 = vmatpush.bf16.msrb.mxu2 %v2357_v60  ;;  %1247 = vmatpush.bf16.msrb.mxu0 %v2353_v4 }
  0xaa   : > { %v3410_v56 = vunpack.c.0.s8 %v1324_v50 }
  0xab   : > { %1304 = vmatpush.bf16.msrb.mxu3 %v2613_v61  ;;  %1266 = vmatpush.bf16.msrb.mxu1 %v2609_v5 }
  0xad   : > { %1286 = vmatpush.bf16.msrb.mxu2 %v2325_v8  ;;  %1248 = vmatpush.bf16.msrb.mxu0 %v2321_v16 }
  0xaf   : > { %1305 = vmatpush.bf16.msrb.mxu3 %v2581_v9  ;;  %1267 = vmatpush.bf16.msrb.mxu1 %v2577_v17 }
  0xb1   : > { %1287 = vmatpush.bf16.msrb.mxu2 %v2293_v19  ;;  %1249 = vmatpush.bf16.msrb.mxu0 %v2289_v24 }
  0xb3   : > { %1306 = vmatpush.bf16.msrb.mxu3 %v2549_v20  ;;  %1268 = vmatpush.bf16.msrb.mxu1 %v2545_v25 }
  0xb4   : > { %1250 = vmatmul.bf16.vlgmr.msrb.gmra.mxu0 %v3356_v44  ;;  %1288 = vmatmul.bf16.vlgmr.msrb.gmra.mxu2 %v3356_v44 }
  0xb6   : > { %1269 = vmatmul.bf16.vlgmr.msrb.gmra.mxu1 %v3358_v49  ;;  %1307 = vmatmul.bf16.vlgmr.msrb.gmra.mxu3 %v3358_v49 }
  0xc4   : > { %1255 = vmatmul.bf16.gmra.mxu0 %v3368_v34  ;;  %1293 = vmatmul.bf16.gmra.mxu2 %v3368_v34 }
  0xc6   : > { %1274 = vmatmul.bf16.gmra.mxu1 %v3370_v39  ;;  %1312 = vmatmul.bf16.gmra.mxu3 %v3370_v39 }
  0xd1   : > { %v1023_v26 = vpop.f32.mrf.mxu0 }
  0xd3   : > { %v1042_v27 = vpop.f32.mrf.mxu1 }
  0xd4   : > { %v1043_v28 = vadd.f32 %v1042_v27, %v1023_v26 }
  0xd6   : > { %v1321_v54 = vrot.slane %v1043_v28, 4 }
  0xd7   : > { %v1061_v29 = vpop.f32.mrf.mxu2 }
  0xd9   : > { %v1080_v30 = vpop.f32.mrf.mxu3  ;;  %v1025_v31 = vpop.f32.mrf.mxu0 }
  0xda   : > { %v1081_v32 = vadd.f32 %v1080_v30, %v1061_v29 }
  0xdb   : > { %v1044_v44 = vpop.f32.mrf.mxu1 }
  0xdc   : > { %v1045_v33 = vadd.f32 %v1044_v44, %v1025_v31  ;;  %v1333_v63 = vrot.slane %v1081_v32, 4 }
  0xde   : > { %v1433_v2 = vrot.slane %v1045_v33, 4 }
  0xdf   : > { %v1063_v35 = vpop.f32.mrf.mxu2 }
  0xe1   : > { %v1082_v36 = vpop.f32.mrf.mxu3  ;;  %v1028_v49 = vpop.f32.mrf.mxu0 }
  0xe2   : > { %v3400_v37 = vadd.f32 %v1082_v36, %v1063_v35 }
  0xe3   : > { %v1047_v38 = vpop.f32.mrf.mxu1 }
  0xe4   : > { %v3402_v34 = vadd.f32 %v1047_v38, %v1028_v49  ;;  %v1445_v22 = vrot.slane %v3400_v37, 4 }
  0xe6   : > { %v1545_v30 = vrot.slane %v3402_v34, 4 }
  0xe7   : > { %v1066_v40 = vpop.f32.mrf.mxu2 }
  0xe9   : > { %v1085_v41 = vpop.f32.mrf.mxu3  ;;  %v1030_v39 = vpop.f32.mrf.mxu0 }
  0xea   : > { %v3404_v42 = vadd.f32 %v1085_v41, %v1066_v40 }
  0xeb   : > { %v1049_v43 = vpop.f32.mrf.mxu1 }
  0xec   : > { %v3406_v45 = vadd.f32 %v1049_v43, %v1030_v39 }
  0xef   : > { %v1068_v46 = vpop.f32.mrf.mxu2 }
  0xf1   : > { %v1087_v47 = vpop.f32.mrf.mxu3  ;;  %v1099_v52 = vpop.f32.mrf.mxu0 }
  0xf2   : > { %v3408_v51 = vadd.f32 %v1087_v47, %v1068_v46 }
  0xf3   : > { %v1118_v53 = vpop.f32.mrf.mxu1 }
  0xf4   : > { %v1119_v55 = vadd.f32 %v1118_v53, %v1099_v52 }
  0xf6   : > { %v1318_v57 = vrot.slane %v1119_v55, 4  ;;  %v1322_v58 = vsel %vm1319_vm0, %v1119_v55, %v1321_v54 }
  0xf7   : > { %v1137_v59 = vpop.f32.mrf.mxu2  ;;  %v1330_v61 = vperm.slane %v1322_v58, %v3410_v56 }
  0xf8   : > { %v1320_v60 = vsel %vm1319_vm0, %v1318_v57, %v1043_v28 }
  0xf9   : > { %v1156_v62 = vpop.f32.mrf.mxu3  ;;  %v1101_v1 = vpop.f32.mrf.mxu0  ;;  %v1326_v4 = vperm.slane %v1320_v60, %v3410_v56  ;;  %v1381_v8 = vrot.slane %v1330_v61, 4  ;;  %v1657_v60 = vrot.slane %v3406_v45, 4 }
  0xfa   : > { %v1157_v0 = vadd.f32 %v1156_v62, %v1137_v59 }
  0xfb   : > { %v1120_v3 = vpop.f32.mrf.mxu1  ;;  %v1369_v16 = vrot.slane %v1326_v4, 4 }
  0xfc   : > { %v1331_v5 = vrot.slane %v1157_v0, 4  ;;  %v1334_v6 = vsel %vm1319_vm0, %v1157_v0, %v1333_v63  ;;  %v1121_v7 = vadd.f32 %v1120_v3, %v1101_v1 }
  0xfd   : > { %v1342_v9 = vperm.slane %v1334_v6, %v3410_v56 }
  0xfe   : > { %v1332_v10 = vsel %vm1319_vm0, %v1331_v5, %v1081_v32  ;;  %v1431_v11 = vrot.slane %v1121_v7, 4  ;;  %v1434_v12 = vsel %vm1319_vm0, %v1121_v7, %v1433_v2 }
  0xff   : > { %v1338_v13 = vperm.slane %v1332_v10, %v3410_v56  ;;  %v1379_v14 = vrot.slane %v1342_v9, 4  ;;  %v3422_v15 = vsel %vm1319_vm0, %v1342_v9, %v1381_v8  ;;  %v1139_v18 = vpop.f32.mrf.mxu2  ;;  %v1442_v23 = vperm.slane %v1434_v12, %v3410_v56 }
 0x100   : > { %v1432_v17 = vsel %vm1319_vm0, %v1431_v11, %v1045_v33 }
 0x101   : > { %v1367_v19 = vrot.slane %v1338_v13, 4  ;;  %v1158_v20 = vpop.f32.mrf.mxu3  ;;  %v3426_v21 = vsel %vm1319_vm0, %v1379_v14, %v1330_v61  ;;  %v1104_v25 = vpop.f32.mrf.mxu0  ;;  %v3431_v26 = vsel %vm1319_vm0, %v1338_v13, %v1369_v16  ;;  %v1438_v27 = vperm.slane %v1432_v17, %v3410_v56 }
 0x102   : > { %v1159_v24 = vadd.f32 %v1158_v20, %v1139_v18  ;;  %v1493_v35 = vrot.slane %v1442_v23, 4 }
 0x103   : > { %v1123_v28 = vpop.f32.mrf.mxu1  ;;  %v3435_v29 = vsel %vm1319_vm0, %v1367_v19, %v1326_v4  ;;  %v1481_v40 = vrot.slane %v1438_v27, 4 }
 0x104   : > { %v1443_v31 = vrot.slane %v1159_v24, 4  ;;  %v1446_v32 = vsel %vm1319_vm0, %v1159_v24, %v1445_v22  ;;  %v1124_v44 = vadd.f32 %v1123_v28, %v1104_v25 }
 0x105   : > { %v1454_v33 = vperm.slane %v1446_v32, %v3410_v56 }
 0x106   : > { %v1444_v36 = vsel %vm1319_vm0, %v1443_v31, %v3400_v37  ;;  %v1543_v49 = vrot.slane %v1124_v44, 4  ;;  %v1546_v38 = vsel %vm1319_vm0, %v1124_v44, %v1545_v30  ;;  %v1557_v37 = vrot.slane %v3404_v42, 4 }
 0x107   : > { %v1450_v41 = vperm.slane %v1444_v36, %v3410_v56  ;;  %v1491_v39 = vrot.slane %v1454_v33, 4  ;;  %v1142_v46 = vpop.f32.mrf.mxu2  ;;  %v3447_v47 = vsel %vm1319_vm0, %v1454_v33, %v1493_v35  ;;  %v1554_v53 = vperm.slane %v1546_v38, %v3410_v56 }
 0x108   : > { %v1544_v43 = vsel %vm1319_vm0, %v1543_v49, %v3402_v34 }
 0x109   : > { %v1479_v48 = vrot.slane %v1450_v41, 4  ;;  %v1161_v50 = vpop.f32.mrf.mxu3  ;;  %v3450_v52 = vsel %vm1319_vm0, %v1450_v41, %v1481_v40  ;;  %v1106_v55 = vpop.f32.mrf.mxu0  ;;  %v3455_v57 = vsel %vm1319_vm0, %v1491_v39, %v1442_v23  ;;  %v1550_v34 = vperm.slane %v1544_v43, %v3410_v56 }
 0x10a   : > { %v1162_v54 = vadd.f32 %v1161_v50, %v1142_v46  ;;  %v1605_v1 = vrot.slane %v1554_v53, 4 }
 0x10b   : > { %v1125_v58 = vpop.f32.mrf.mxu1  ;;  %v3459_v59 = vsel %vm1319_vm0, %v1479_v48, %v1438_v27  ;;  %v1593_v5 = vrot.slane %v1550_v34, 4  ;;  %v3219_v48 = vmov 1934713408  }
 0x10c   : > { %v1555_v61 = vrot.slane %v1162_v54, 4  ;;  %v1558_v62 = vsel %vm1319_vm0, %v1162_v54, %v1557_v37  ;;  %v1126_v63 = vadd.f32 %v1125_v58, %v1106_v55  ;;  %v1372_v50 = vunpack.c.l.s4 %v3219_v48 }
 0x10d   : > { %v1566_v0 = vperm.slane %v1558_v62, %v3410_v56 }
 0x10e   : > { %v1556_v2 = vsel %vm1319_vm0, %v1555_v61, %v3404_v42  ;;  %v1655_v3 = vrot.slane %v1126_v63, 4  ;;  %v1658_v4 = vsel %vm1319_vm0, %v1126_v63, %v1657_v60  ;;  %v1669_v42 = vrot.slane %v3408_v51, 4 }
 0x10f   : > { %v1562_v6 = vperm.slane %v1556_v2, %v3410_v56  ;;  %v1603_v7 = vrot.slane %v1566_v0, 4  ;;  %v1144_v9 = vpop.f32.mrf.mxu2  ;;  %v1606_v10 = vsel %vm1319_vm0, %v1566_v0, %v1605_v1  ;;  %v1666_v12 = vperm.slane %v1658_v4, %v3410_v56 }
 0x110   : > { %v1656_v8 = vsel %vm1319_vm0, %v1655_v3, %v3406_v45  ;;  %v3502_v54 = vunpack.c.0.s8 %v1372_v50  ;;  %v1767_v63 = vlaneseq }
 0x111   : > { %v1591_v11 = vrot.slane %v1562_v6, 4  ;;  %v1163_v13 = vpop.f32.mrf.mxu3  ;;  %v1594_v14 = vsel %vm1319_vm0, %v1562_v6, %v1593_v5  ;;  %v1175_v17 = vpop.f32.mrf.mxu0  ;;  %v1604_v18 = vsel %vm1319_vm0, %v1603_v7, %v1554_v53  ;;  %v1662_v19 = vperm.slane %v1656_v8, %v3410_v56 }
 0x112   : > { %v1164_v16 = vadd.f32 %v1163_v13, %v1144_v9  ;;  %v1717_v24 = vrot.slane %v1666_v12, 4  ;;  %v3510_v58 = vperm.slane %v3422_v15, %v3502_v54  ;;  %v3514_v60 = vperm.slane %v3426_v21, %v3502_v54 }
 0x113   : > { %v1194_v20 = vpop.f32.mrf.mxu1  ;;  %v1592_v45 = vsel %vm1319_vm0, %v1591_v11, %v1550_v34  ;;  %v1705_v28 = vrot.slane %v1662_v19, 4  ;;  %v3521_v61 = vperm.slane %v3431_v26, %v3502_v54  ;;  %v3525_v62 = vperm.slane %v3435_v29, %v3502_v54 }
 0x114   : > { %v1667_v22 = vrot.slane %v1164_v16, 4  ;;  %v1670_v23 = vsel %vm1319_vm0, %v1164_v16, %v1669_v42  ;;  %v3529_v15 = vperm.slane %v3450_v52, %v3502_v54  ;;  %v3533_v21 = vperm.slane %v3455_v57, %v3502_v54 }
 0x115   : > { %v1678_v25 = vperm.slane %v1670_v23, %v3410_v56  ;;  %v1195_v0 = vadd.f32 %v1194_v20, %v1175_v17  ;;  %v3539_v26 = vperm.slane %v3447_v47, %v3502_v54  ;;  %v1429_v29 = vrot.slane %v3510_v58, 4 }
 0x116   : > { %v1668_v27 = vsel %vm1319_vm0, %v1667_v22, %v3408_v51  ;;  %v1425_v3 = vrot.slane %v3514_v60, 4  ;;  %v3548_v52 = vperm.slane %v3459_v59, %v3502_v54  ;;  %v3551_v57 = vperm.slane %v1594_v14, %v3502_v54 }
 0x117   : > { %v1674_v30 = vperm.slane %v1668_v27, %v3410_v56  ;;  %v1715_v31 = vrot.slane %v1678_v25, 4  ;;  %v3483_v32 = vsel %vm1319_vm0, %v1678_v25, %v1717_v24  ;;  %v1213_v44 = vpop.f32.mrf.mxu2  ;;  %v1421_v5 = vrot.slane %v3521_v61, 4 }
 0x118   : > { %v1417_v47 = vrot.slane %v3525_v62, 4  ;;  %v3556_v6 = vperm.slane %v1606_v10, %v3502_v54  ;;  %v3559_v7 = vperm.slane %v1604_v18, %v3502_v54  ;;  %v3561_v9 = vand.u32 127, %v1767_v63 }
 0x119   : > { %v1703_v33 = vrot.slane %v1674_v30, 4  ;;  %v1232_v35 = vpop.f32.mrf.mxu3  ;;  %v3486_v36 = vsel %vm1319_vm0, %v1674_v30, %v1705_v28  ;;  %v3489_v49 = vsel %vm1319_vm0, %v1715_v31, %v1666_v12  ;;  %v1177_v38 = vpop.f32.mrf.mxu0  ;;  %v1533_v59 = vrot.slane %v3529_v15, 4 }
 0x11a   : > { %v1537_v11 = vrot.slane %v3533_v21, 4  ;;  %v3566_v12 = vperm.slane %v1592_v45, %v3502_v54  ;;  %v1345_v13 = vrot.slane %v1195_v0, 4  ;;  %v1832_v42 = vstv %s2937_s23  ;;  %s2961_s23 = sadd.s32 1920, %s3517_s18 }
 0x11b   : > { %v1196_v40 = vpop.f32.mrf.mxu1  ;;  %v1704_v51 = vsel %vm1319_vm0, %v1703_v33, %v1662_v19  ;;  %v1541_v10 = vrot.slane %v3539_v26, 4  ;;  %v1233_v16 = vadd.f32 %v1232_v35, %v1213_v44  ;;  %v1529_v18 = vrot.slane %v3548_v52, 4 }
 0x11c   : > { %v3570_v17 = vadd.f32 %v1196_v40, %v1177_v38  ;;  %v1645_v19 = vrot.slane %v3551_v57, 4  ;;  %v1653_v45 = vrot.slane %v3556_v6, 4  ;;  %v3579_v24 = vadd.s32 %v1832_v42, %v3561_v9 }
 0x11d   : > { %v1813_v25 = vstv %s2935_s17  ;;  %v1641_v27 = vrot.slane %v3566_v12, 4  ;;  %v3583_v28 = vperm.slane %v1704_v51, %v3502_v54  ;;  %v1794_v31 = vstv %s2933_s21  ;;  %s2962_s17 = sshll.u32 %s3264_s16, 6 }
 0x11e   : > { %v3587_v44 = vperm.slane %v3486_v36, %v3502_v54  ;;  %v3591_v33 = vperm.slane %v3489_v49, %v3502_v54  ;;  %v3595_v35 = vperm.slane %v3483_v32, %v3502_v54  ;;  %v1357_v38 = vrot.slane %v1233_v16, 4 }
 0x11f   : > { %v3492_v41 = vpop.f32.mrf.mxu2  ;;  %v1457_v40 = vrot.slane %v3570_v17, 4  ;;  %vm1834_vm1 = vcmp.lt.s32.totalorder %v3579_v24, 3000 }
 0x121   : > { %v1234_v39 = vpop.f32.mrf.mxu3  ;;  %v3494_v43 = vpop.f32.mrf.mxu0 }
 0x122   : > { %v3599_v51 = vadd.f32 %v1234_v39, %v3492_v41 }
 0x123   : > { %v3496_v46 = vpop.f32.mrf.mxu1 }
 0x124   : > { %v3604_v36 = vadd.f32 %v3496_v46, %v3494_v43 }
 0x127   : > { %v3498_v37 = vpop.f32.mrf.mxu2 }
 0x129   : > { %v3500_v53 = vpop.f32.mrf.mxu3  ;;  %v3504_v55 = vpop.f32.mrf.mxu0 }
 0x12a   : > { %v3612_v41 = vadd.f32 %v3500_v53, %v3498_v37 }
 0x12b   : > { %v3506_v34 = vpop.f32.mrf.mxu1 }
 0x12c   : > { %v3625_v42 = vadd.f32 %v3506_v34, %v3504_v55 }
 0x12f   : > { %v3535_v1 = vpop.f32.mrf.mxu2 }
 0x131   : > { %v3541_v2 = vpop.f32.mrf.mxu3  ;;  %v1251_v4 = vpop.f32.mrf.mxu0 }
 0x133   : > { %v1270_v8 = vpop.f32.mrf.mxu1 }
 0x134   : > { %v1271_v14 = vadd.f32 %v1270_v8, %v1251_v4  ;;  %v3608_v4 = vadd.s32 %v1813_v25, %v3561_v9  ;;  %v3616_v8 = vadd.s32 %v1794_v31, %v3561_v9  ;;  %v1569_v25 = vrot.slane %v3604_v36, 4 }
 0x136   : > { %v1343_v20 = vrot.slane %v1271_v14, 4  ;;  %v1346_v22 = vsel %vm1319_vm0, %v1271_v14, %v1345_v13  ;;  %v1774_v14 = vstv %s3517_s18  ;;  %vm1815_vm2 = vcmp.lt.s32.totalorder %v3608_v4, 3000  ;;  %s2099_s18 = scalar_lea.hbm %s4080_s2, %s2962_s17 }
 0x137   : > { %v1289_v30 = vpop.f32.mrf.mxu2  ;;  %v1354_v48 = vperm.slane %v1346_v22, %v3410_v56  ;;  %v1469_v22 = vrot.slane %v3599_v51, 4  ;;  %v3640_v34 = vadd.s32 %v1774_v14, %v3561_v9  ;;  %vm1796_vm3 = vcmp.lt.s32.totalorder %v3616_v8, 3000 }
 0x138   : > { %v1344_v49 = vsel %vm1319_vm0, %v1343_v20, %v1195_v0 }
 0x139   : > { %v1308_v50 = vpop.f32.mrf.mxu3  ;;  %v1253_v32 = vpop.f32.mrf.mxu0  ;;  %v3628_v37 = vperm.slane %v1344_v49, %v3410_v56  ;;  %v1405_v53 = vrot.slane %v1354_v48, 4  ;;  %vm1776_vm4 = vcmp.lt.s32.totalorder %v3640_v34, 3000 }
 0x13a   : > { %v1309_v63 = vadd.f32 %v1308_v50, %v1289_v30  ;;  %v1581_v50 = vrot.slane %v3612_v41, 4 }
 0x13b   : > { %v1272_v39 = vpop.f32.mrf.mxu1 }
 0x13c   : > { %v1355_v46 = vrot.slane %v1309_v63, 4  ;;  %v1358_v0 = vsel %vm1319_vm0, %v1309_v63, %v1357_v38  ;;  %v3620_v13 = vadd.f32 %v1272_v39, %v1253_v32 }
 0x13d   : > { %v1366_v20 = vperm.slane %v1358_v0, %v3410_v56  ;;  %v1393_v0 = vrot.slane %v3628_v37, 4 }
 0x13e   : > { %v1356_v30 = vsel %vm1319_vm0, %v1355_v46, %v1233_v16  ;;  %v1455_v38 = vrot.slane %v3620_v13, 4  ;;  %v1870_v16 = vstv %s2941_s22  ;;  %v3649_v46 = vadd.f32 %v3541_v2, %v3535_v1 }
 0x13f   : > { %v1403_v31 = vrot.slane %v1366_v20, 4  ;;  %v1406_v55 = vsel %vm1319_vm0, %v1366_v20, %v1405_v53  ;;  %v1362_v49 = vperm.slane %v1356_v30, %v3410_v56  ;;  %v1291_v63 = vpop.f32.mrf.mxu2 }
 0x140   : > { %v1414_v32 = vperm.slane %v1406_v55, %v3502_v54  ;;  %v1456_v1 = vsel %vm1319_vm0, %v1455_v38, %v3570_v17 }
 0x141   : > { %v1310_v14 = vpop.f32.mrf.mxu3  ;;  %v1404_v53 = vsel %vm1319_vm0, %v1403_v31, %v1354_v48  ;;  %v1256_v30 = vpop.f32.mrf.mxu0  ;;  %v3663_v31 = vadd.s32 %v1870_v16, %v3561_v9  ;;  %v3687_v24 = vperm.slane %v1456_v1, %v3410_v56 }
 0x142   : > { %v1311_v20 = vadd.f32 %v1310_v14, %v1291_v63  ;;  %v1430_v55 = vsel %vm1319_vm0, %v1414_v32, %v1429_v29  ;;  %v1427_v43 = vrot.slane %v1414_v32, 4  ;;  %v1410_v23 = vperm.slane %v1404_v53, %v3502_v54 }
 0x143   : > { %v1275_v2 = vpop.f32.mrf.mxu1  ;;  %v1838_v39 = vsel %vm1834_vm1, %v1430_v55, 0.0  ;;  %v1827_v48 = vpack.c.bf16 %v1430_v55, %v1430_v55  ;;  %v1391_v63 = vrot.slane %v1362_v49, 4  ;;  %v1394_v32 = vsel %vm1319_vm0, %v1362_v49, %v1393_v0 }
 0x144   : > { %v1467_v14 = vrot.slane %v1311_v20, 4  ;;  %1841 = vadd.xlane.f32.xlu1 %v1838_v39  ;;  %v1428_v29 = vsel %vm1319_vm0, %v1427_v43, %v3510_v58  ;;  %v1276_v38 = vadd.f32 %v1275_v2, %v1256_v30  ;;  %v1426_v39 = vsel %vm1319_vm0, %v1410_v23, %v1425_v3 }
 0x145   : > { %1829 = vst [vmem:[%s3672_s29 + $0x4c] sm:$0xf] %v1827_v48  ;;  %v1837_v16 = vsel %vm1834_vm1, %v1428_v29, 0.0  ;;  %v1826_v53 = vpack.c.bf16 %v1428_v29, %v1428_v29  ;;  %v1693_v58 = vrot.slane %v3649_v46, 4  ;;  %v1470_v49 = vsel %vm1319_vm0, %v1311_v20, %v1469_v22 }
 0x146   : > { %v1468_v43 = vsel %vm1319_vm0, %v1467_v14, %v3599_v51  ;;  %1839 = vadd.xlane.f32.xlu0 %v1837_v16  ;;  %v1819_v0 = vsel %vm1815_vm2, %v1426_v39, 0.0  ;;  %v1808_v30 = vpack.c.bf16 %v1426_v39, %v1426_v39  ;;  %v1889_v3 = vstv %s2943_s27  ;;  %s2102_s27 = sshll.u32 %s2099_s18, 4  ;;  %s2103_s27 = int_to_ptr.hbm [resolvable:$true] %s2102_s27 }
 0x147   : > { %1828 = vst [vmem:[%s3672_s29 + $0xc] sm:$0xf] %v1826_v53  ;;  %1822 = vadd.xlane.f32.xlu2 %v1819_v0  ;;  %v1908_v55 = vstv %s2945_s28  ;;  %v1458_v51 = vsel %vm1319_vm0, %v3620_v13, %v1457_v40  ;;  %v1294_v22 = vpop.f32.mrf.mxu2  ;;  %v1402_v20 = vperm.slane %v1394_v32, %v3502_v54  ;;  %v1423_v2 = vrot.slane %v1410_v23, 4  ;;  %s2083_s28 = scalar_lea.sflag [#allocation4], %s3338_s10 }
 0x148   : > { %v1392_v48 = vsel %vm1319_vm0, %v1391_v63, %v3628_v37  ;;  %v3698_v1 = vperm.slane %v1468_v43, %v3410_v56  ;;  %v1478_v14 = vperm.slane %v1470_v49, %v3410_v56  ;;  %v1567_v29 = vrot.slane %v1276_v38, 4  ;;  %1810 = vst [vmem:[%s3672_s29 + $0x48] sm:$0xf] %v1808_v30 }
 0x149   : > { %v1313_v16 = vpop.f32.mrf.mxu3  ;;  %v1398_v17 = vperm.slane %v1392_v48, %v3502_v54  ;;  %v1422_v23 = vsel %vm1319_vm0, %v1402_v20, %v1421_v5  ;;  %v1424_v13 = vsel %vm1319_vm0, %v1423_v2, %v3514_v60  ;;  %v1419_v37 = vrot.slane %v1402_v20, 4  ;;  %v1258_v2 = vpop.f32.mrf.mxu0 }
 0x14a   : > { %v1314_v40 = vadd.f32 %v1313_v16, %v1294_v22  ;;  %v1466_v63 = vperm.slane %v1458_v51, %v3410_v56  ;;  %v1505_v32 = vrot.slane %v3687_v24, 4  ;;  %v1800_v53 = vsel %vm1796_vm3, %v1422_v23, 0.0 }
 0x14b   : > { %v1788_v39 = vpack.c.bf16 %v1422_v23, %v1422_v23  ;;  %vm1872_vm5 = vcmp.lt.s32.totalorder %v3663_v31, 3000  ;;  %v1807_v49 = vpack.c.bf16 %v1424_v13, %v1424_v13  ;;  %v3715_v5 = vadd.s32 %v1889_v3, %v3561_v9  ;;  %v1277_v48 = vpop.f32.mrf.mxu1 }
 0x14c   : > { %v1579_v43 = vrot.slane %v1314_v40, 4  ;;  %1803 = vadd.xlane.f32.xlu1 %v1800_v53  ;;  %v1851_v0 = vstv %s2939_s30  ;;  %v1568_v60 = vsel %vm1319_vm0, %v1567_v29, %v3604_v36  ;;  %v1418_v30 = vsel %vm1319_vm0, %v1398_v17, %v1417_v47  ;;  %s3123_s30 = sshra.s32 %s2103_s27, 4  ;;  %s3124_s30 = int_to_ptr.hbm [resolvable:$true] %s3123_s30 }
 0x14d   : > { %1790 = vst [vmem:[%s3672_s29 + $0x44] sm:$0xf] %v1788_v39  ;;  %v1420_v51 = vsel %vm1319_vm0, %v1419_v37, %v3521_v61  ;;  %v1506_v22 = vsel %vm1319_vm0, %v3698_v1, %v1505_v32  ;;  %v1515_v20 = vrot.slane %v1478_v14, 4  ;;  %v1818_v3 = vsel %vm1815_vm2, %v1424_v13, 0.0  ;;  %p3130_p11 = scmp.lt.s32.totalorder %s3124_s30, %s4080_s2 }
 0x14e   : > { %1809 = vst [vmem:[%s3672_s29 + $0x8] sm:$0xf] %v1807_v49  ;;  %v1780_v29 = vsel %vm1776_vm4, %v1418_v30, 0.0  ;;  %v3733_v16 = vadd.s32 %v1908_v55, %v3561_v9  ;;  %v1517_v47 = vrot.slane %v1466_v63, 4  ;;  %v1570_v61 = vsel %vm1319_vm0, %v1276_v38, %v1569_v25 }
 0x14f   : > { %1820 = vadd.xlane.f32.xlu2 %v1818_v3  ;;  %1783 = vadd.xlane.f32.xlu0 %v1780_v29  ;;  %v1770_v23 = vpack.c.bf16 %v1418_v30, %v1418_v30  ;;  %v3739_v4 = vadd.s32 %v1851_v0, %v3561_v9  ;;  %v3742_v13 = vperm.slane %v1568_v60, %v3410_v56  ;;  %v1296_v37 = vpop.f32.mrf.mxu2  ;;  %vm1891_vm6 = vcmp.lt.s32.totalorder %v3715_v5, 3000 }
 0x150   : > { %v1580_v55 = vsel %vm1319_vm0, %v1579_v43, %v3612_v41  ;;  %v1787_v32 = vpack.c.bf16 %v1420_v51, %v1420_v51  ;;  %v1514_v36 = vperm.slane %v1506_v22, %v3502_v54  ;;  %v1503_v25 = vrot.slane %v3698_v1, 4 }
 0x151   : > { %v1582_v38 = vsel %vm1319_vm0, %v1314_v40, %v1581_v50  ;;  %v3752_v53 = vadd.f32 %v1277_v48, %v1258_v2  ;;  %1772 = vst [vmem:[%s3672_s29 + $0x40] sm:$0xf] %v1770_v23  ;;  %v1315_v39 = vpop.f32.mrf.mxu3  ;;  %v1415_v49 = vrot.slane %v1398_v17, 4  ;;  %v1516_v1 = vsel %vm1319_vm0, %v1515_v20, %v1466_v63 }
 0x152   : > { %v3756_v0 = vadd.f32 %v1315_v39, %v1296_v37  ;;  %1789 = vst [vmem:[%s3672_s29 + $0x4] sm:$0xf] %v1787_v32  ;;  %v1534_v43 = vsel %vm1319_vm0, %v1514_v36, %v1533_v59  ;;  %v1518_v41 = vsel %vm1319_vm0, %v1478_v14, %v1517_v47  ;;  %v1586_v50 = vperm.slane %v1580_v55, %v3410_v56 }
 0x153   : > { %v1799_v40 = vsel %vm1796_vm3, %v1420_v51, 0.0  ;;  %v1865_v60 = vpack.c.bf16 %v1534_v43, %v1534_v43  ;;  %v1416_v17 = vsel %vm1319_vm0, %v1415_v49, %v3525_v62  ;;  %vm1910_vm7 = vcmp.lt.s32.totalorder %v3733_v16, 3000 }
 0x154   : > { %v3771_v30 = vperm.slane %v1570_v61, %v3410_v56  ;;  %v1617_v59 = vrot.slane %v3742_v13, 4  ;;  %1801 = vadd.xlane.f32.xlu1 %v1799_v40  ;;  %v1769_v63 = vpack.c.bf16 %v1416_v17, %v1416_v17  ;;  %v3774_v14 = vstv %s2949_s7  ;;  %s3125_s7 = scalar_lea.hbm %s3124_s30, 128 }
 0x155   : > { %v1691_v22 = vrot.slane %v3756_v0, 4  ;;  %1867 = vst [vmem:[%s3672_s29 + $0x54] sm:$0xf] %v1865_v60  ;;  %v1522_v8 = vperm.slane %v1516_v1, %v3502_v54  ;;  %v1526_v51 = vperm.slane %v1518_v41, %v3502_v54  ;;  %v1531_v62 = vrot.slane %v1514_v36, 4  ;;  %p3126_p1 = scmp.ne.s32.totalorder %s3124_s30, %s3125_s7 }
 0x156   : > { %v3781_v20 = vperm.slane %v1582_v38, %v3410_v56  ;;  %v1679_v2 = vrot.slane %v3752_v53, 4  ;;  %v1876_v48 = vsel %vm1872_vm5, %v1534_v43, 0.0  ;;  %v1779_v3 = vsel %vm1776_vm4, %v1416_v17, 0.0  ;;  %1771 = vst [vmem:[%s3672_s29] sm:$0xf] %v1769_v63 }
 0x157   : > { %v1615_v29 = vrot.slane %v1586_v50, 4  ;;  %1879 = vadd.xlane.f32.xlu2 %v1876_v48  ;;  %1781 = vadd.xlane.f32.xlu0 %v1779_v3  ;;  %v1538_v47 = vsel %vm1319_vm0, %v1522_v8, %v1537_v11  ;;  %v1539_v61 = vrot.slane %v1526_v51, 4  ;;  %v1504_v23 = vsel %vm1319_vm0, %v1503_v25, %v3687_v24  ;;  %p3127_p4 = pnand %p3126_p1, %p3310_p7 }
 0x158   : > { %v1884_v55 = vpack.c.bf16 %v1538_v47, %v1538_v47  ;;  %v1542_v34 = vsel %vm1319_vm0, %v1526_v51, %v1541_v10  ;;  %v1532_v37 = vsel %vm1319_vm0, %v1531_v62, %v3529_v15  ;;  %v1618_v32 = vsel %vm1319_vm0, %v1586_v50, %v1617_v59 }
 0x159   : > { %v1629_v36 = vrot.slane %v3771_v30, 4  ;;  %v1692_v11 = vsel %vm1319_vm0, %v1691_v22, %v3649_v46  ;;  %v1540_v38 = vsel %vm1319_vm0, %v1539_v61, %v3539_v26  ;;  %v1903_v24 = vpack.c.bf16 %v1542_v34, %v1542_v34  ;;  %p3128_p8 = pneg %p3127_p4 }
 0x15a   : > { %v1627_v25 = vrot.slane %v3781_v20, 4  ;;  %v1680_v10 = vsel %vm1319_vm0, %v1679_v2, %v3625_v42  ;;  %1886 = vst [vmem:[%s3672_s29 + $0x58] sm:$0xf] %v1884_v55  ;;  %v1902_v15 = vpack.c.bf16 %v1540_v38, %v1540_v38  ;;  %v1864_v39 = vpack.c.bf16 %v1532_v37, %v1532_v37 }
 0x15b   : > { %v1895_v49 = vsel %vm1891_vm6, %v1538_v47, 0.0  ;;  %1905 = vst [vmem:[%s3672_s29 + $0x5c] sm:$0xf] %v1903_v24  ;;  %v1510_v43 = vperm.slane %v1504_v23, %v3502_v54  ;;  %vm1853_vm8 = vcmp.lt.s32.totalorder %v3739_v4, 3000  ;;  %v3815_v26 = vperm.slane %v1618_v32, %v3502_v54 }
 0x15c   : > { %v1630_v1 = vsel %vm1319_vm0, %v3781_v20, %v1629_v36  ;;  %v3820_v41 = vperm.slane %v1692_v11, %v3410_v56  ;;  %1898 = vadd.xlane.f32.xlu1 %v1895_v49  ;;  %1904 = vst [vmem:[%s3672_s29 + $0x1c] sm:$0xf] %v1902_v15  ;;  %v1535_v40 = vrot.slane %v1522_v8, 4  ;;  %v1616_v60 = vsel %vm1319_vm0, %v1615_v29, %v3742_v13 }
 0x15d   : > { %v1638_v50 = vperm.slane %v1630_v1, %v3502_v54  ;;  %1866 = vst [vmem:[%s3672_s29 + $0x14] sm:$0xf] %v1864_v39  ;;  %v1527_v17 = vrot.slane %v1510_v43, 4  ;;  %v1530_v59 = vsel %vm1319_vm0, %v1510_v43, %v1529_v18  ;;  %v3834_v63 = vsel %vm1319_vm0, %v3815_v26, %v1645_v19 }
 0x15e   : > { %v1622_v22 = vperm.slane %v1616_v60, %v3502_v54  ;;  %v1913_v8 = vsel %vm1910_vm7, %v1540_v38, 0.0  ;;  %v1914_v13 = vsel %vm1910_vm7, %v1542_v34, 0.0  ;;  %v1846_v51 = vpack.c.bf16 %v1530_v59, %v1530_v59 }
 0x15f   : > { %v1941_v18 = vpack.c.bf16 %v3834_v63, %v3834_v63  ;;  %1915 = vadd.xlane.f32.xlu2 %v1913_v8  ;;  %1917 = vadd.xlane.f32.xlu0 %v1914_v13  ;;  %v1528_v19 = vsel %vm1319_vm0, %v1527_v17, %v3548_v52  ;;  %v3848_v62 = vsel %vm1319_vm0, %v1638_v50, %v1653_v45  ;;  %v1651_v20 = vrot.slane %v1638_v50, 4 }
 0x160   : > { %v3853_v16 = vsel %vm1319_vm0, %v1535_v40, %v3533_v21  ;;  %v1694_v2 = vsel %vm1319_vm0, %v3756_v0, %v1693_v58  ;;  %v1727_v48 = vrot.slane %v3820_v41, 4  ;;  %v1845_v52 = vpack.c.bf16 %v1528_v19, %v1528_v19  ;;  %1848 = vst [vmem:[%s3672_s29 + $0x50] sm:$0xf] %v1846_v51 }
 0x161   : > { %v1979_v45 = vpack.c.bf16 %v3848_v62, %v3848_v62  ;;  %v1686_v3 = vperm.slane %v1680_v10, %v3410_v56  ;;  %1943 = vst [vmem:[%s3672_s29 + $0x64] sm:$0xf] %v1941_v18  ;;  %v1883_v21 = vpack.c.bf16 %v3853_v16, %v3853_v16  ;;  %v3869_v46 = vsel %vm1319_vm0, %v1651_v20, %v3556_v6 }
 0x162   : > { %v3874_v58 = vsel %vm1319_vm0, %v1622_v22, %v1641_v27  ;;  %v4087_v0 = vrot.slane %v3625_v42, 4  ;;  %1847 = vst [vmem:[%s3672_s29 + $0x10] sm:$0xf] %v1845_v52  ;;  %v1984_v47 = vstv %s2953_s8  ;;  %v1978_v61 = vpack.c.bf16 %v3869_v46, %v3869_v46 }
 0x163   : > { %v1922_v6 = vpack.c.bf16 %v3874_v58, %v3874_v58  ;;  %v3886_v23 = vperm.slane %v1694_v2, %v3410_v56  ;;  %v1875_v27 = vsel %vm1872_vm5, %v1532_v37, 0.0  ;;  %1981 = vst [vmem:[%s3672_s29 + $0x6c] sm:$0xf] %v1979_v45  ;;  %v1628_v42 = vsel %vm1319_vm0, %v1627_v25, %v3771_v30 }
 0x164   : > { %v1682_v29 = vsel %vm1319_vm0, %v3752_v53, %v4087_v0  ;;  %v1639_v53 = vrot.slane %v1622_v22, 4  ;;  %1877 = vadd.xlane.f32.xlu1 %v1875_v27  ;;  %v3895_v55 = vadd.s32 %v3774_v14, %v3561_v9  ;;  %1885 = vst [vmem:[%s3672_s29 + $0x18] sm:$0xf] %v1883_v21  ;;  %v1634_v34 = vperm.slane %v1628_v42, %v3502_v54 }
 0x165   : > { %v1643_v32 = vrot.slane %v3815_v26, 4  ;;  %v1728_v36 = vsel %vm1319_vm0, %v1727_v48, %v1686_v3  ;;  %v1729_v31 = vrot.slane %v1686_v3, 4  ;;  %v3902_v37 = vadd.s32 %v1984_v47, %v3561_v9  ;;  %1980 = vst [vmem:[%s3672_s29 + $0x2c] sm:$0xf] %v1978_v61 }
 0x166   : > { %v3907_v30 = vsel %vm1319_vm0, %v1639_v53, %v3566_v12  ;;  %v1734_v14 = vperm.slane %v1728_v36, %v3502_v54  ;;  %v1856_v11 = vsel %vm1853_vm8, %v1528_v19, 0.0  ;;  %v1857_v38 = vsel %vm1853_vm8, %v1530_v59, 0.0  ;;  %1924 = vst [vmem:[%s3672_s29 + $0x60] sm:$0xf] %v1922_v6 }
 0x167   : > { %v4088_v24 = vrot.slane %v3559_v7, 4  ;;  %v1921_v12 = vpack.c.bf16 %v3907_v30, %v3907_v30  ;;  %v1690_v10 = vperm.slane %v1682_v29, %v3410_v56  ;;  %v1739_v15 = vrot.slane %v3886_v23, 4  ;;  %1858 = vadd.xlane.f32.xlu2 %v1856_v11  ;;  %1860 = vadd.xlane.f32.xlu0 %v1857_v38 }
 0x168   : > { %v1647_v39 = vrot.slane %v1634_v34, 4  ;;  %vm1948_vm9 = vcmp.lt.s32.totalorder %v3895_v55, 3000  ;;  %v3931_v49 = vsel %vm1319_vm0, %v1643_v32, %v3551_v57  ;;  %v4089_v43 = vrot.slane %v3583_v28, 4 }
 0x169   : > { %v3918_v25 = vsel %vm1319_vm0, %v1634_v34, %v4088_v24  ;;  %1923 = vst [vmem:[%s3672_s29 + $0x20] sm:$0xf] %v1921_v12  ;;  %v1730_v26 = vsel %vm1319_vm0, %v3820_v41, %v1729_v31  ;;  %v1940_v57 = vpack.c.bf16 %v3931_v49, %v3931_v49  ;;  %v1757_v40 = vrot.slane %v3587_v44, 4 }
 0x16a   : > { %v1960_v4 = vpack.c.bf16 %v3918_v25, %v3918_v25  ;;  %v3936_v56 = vsel %vm1319_vm0, %v1734_v14, %v4089_v43  ;;  %v3944_v1 = vsel %vm1319_vm0, %v1647_v39, %v3559_v7  ;;  %vm1986_vm10 = vcmp.lt.s32.totalorder %v3902_v37, 3000 }
 0x16b   : > { %v1998_v50 = vpack.c.bf16 %v3936_v56, %v3936_v56  ;;  %v1959_v41 = vpack.c.bf16 %v3944_v1, %v3944_v1  ;;  %v1738_v60 = vperm.slane %v1730_v26, %v3502_v54  ;;  %v1761_v17 = vrot.slane %v3591_v33, 4  ;;  %1942 = vst [vmem:[%s3672_s29 + $0x24] sm:$0xf] %v1940_v57 }
 0x16c   : > { %1962 = vst [vmem:[%s3672_s29 + $0x68] sm:$0xf] %v1960_v4  ;;  %v1741_v7 = vrot.slane %v1690_v10, 4  ;;  %v1952_v59 = vsel %vm1948_vm9, %v3834_v63, 0.0  ;;  %v1927_v22 = vstv %s2947_s6  ;;  %v1740_v8 = vsel %vm1319_vm0, %v1739_v15, %v1690_v10 }
 0x16d   : > { %1955 = vadd.xlane.f32.xlu1 %v1952_v59  ;;  %v1965_v13 = vstv %s2951_s9  ;;  %1961 = vst [vmem:[%s3672_s29 + $0x28] sm:$0xf] %v1959_v41  ;;  %v1755_v51 = vrot.slane %v1738_v60, 4  ;;  %v1758_v18 = vsel %vm1319_vm0, %v1738_v60, %v1757_v40  ;;  %v1746_v19 = vperm.slane %v1740_v8, %v3502_v54  ;;  %s3129_s9 = scalar_lea.hbm %s4080_s2, 256 }
 0x16e   : > { %v1990_v20 = vsel %vm1986_vm10, %v3848_v62, 0.0  ;;  %v1894_v63 = vsel %vm1891_vm6, %v3853_v16, 0.0  ;;  %2000 = vst [vmem:[%s3672_s29 + $0x70] sm:$0xf] %v1998_v50  ;;  %v2017_v2 = vpack.c.bf16 %v1758_v18, %v1758_v18  ;;  %v1751_v48 = vrot.slane %v1734_v14, 4  ;;  %p3131_p9 = scmp.lt.s32.totalorder %s3129_s9, %s3125_s7 }
 0x16f   : > { %v1928_v52 = vadd.s32 %v1927_v22, %v3561_v9  ;;  %v1756_v45 = vsel %vm1319_vm0, %v1755_v51, %v3587_v44  ;;  %v1759_v3 = vrot.slane %v1746_v19, 4  ;;  %v1762_v21 = vsel %vm1319_vm0, %v1746_v19, %v1761_v17  ;;  %1993 = vadd.xlane.f32.xlu2 %v1990_v20  ;;  %1896 = vadd.xlane.f32.xlu0 %v1894_v63 }
 0x170   : > { %v1966_v62 = vadd.s32 %v1965_v13, %v3561_v9  ;;  %v2016_v5 = vpack.c.bf16 %v1756_v45, %v1756_v45  ;;  %2019 = vst [vmem:[%s3672_s29 + $0x74] sm:$0xf] %v2017_v2  ;;  %v1742_v16 = vsel %vm1319_vm0, %v3886_v23, %v1741_v7  ;;  %v2036_v29 = vpack.c.bf16 %v1762_v21, %v1762_v21  ;;  %p3132_p2 = por %p3131_p9, %p3130_p11 }
 0x171   : > { %v1760_v0 = vsel %vm1319_vm0, %v1759_v3, %v3591_v33  ;;  %v1752_v44 = vsel %vm1319_vm0, %v1751_v48, %v3583_v28  ;;  %v1750_v6 = vperm.slane %v1742_v16, %v3502_v54  ;;  %v1765_v27 = vrot.slane %v3595_v35, 4 }
 0x172   : > { %2018 = vst [vmem:[%s3672_s29 + $0x34] sm:$0xf] %v2016_v5  ;;  %v2035_v47 = vpack.c.bf16 %v1760_v0, %v1760_v0  ;;  %v1997_v61 = vpack.c.bf16 %v1752_v44, %v1752_v44  ;;  %v1989_v23 = vsel %vm1986_vm10, %v3869_v46, 0.0  ;;  %vm1929_vm11 = vcmp.lt.s32.totalorder %v1928_v52, 3000  ;;  %p3133_p10 = pnand %p3132_p2, %p3128_p8 }
 0x173   : > { %2038 = vst [vmem:[%s3672_s29 + $0x78] sm:$0xf] %v2036_v29  ;;  %vm1967_vm12 = vcmp.lt.s32.totalorder %v1966_v62, 3000  ;;  %v1766_v28 = vsel %vm1319_vm0, %v1750_v6, %v1765_v27  ;;  %v1763_v33 = vrot.slane %v1750_v6, 4  ;;  %v1933_v54 = vsel %vm1929_vm11, %v3874_v58, 0.0 }
 0x174   : > { %2037 = vst [vmem:[%s3672_s29 + $0x38] sm:$0xf] %v2035_v47  ;;  %v2055_v42 = vpack.c.bf16 %v1766_v28, %v1766_v28  ;;  %v1971_v53 = vsel %vm1967_vm12, %v3918_v25, 0.0  ;;  %v2003_v32 = vstv %s2955_s11  ;;  %v1932_v58 = vsel %vm1929_vm11, %v3907_v30, 0.0 }
 0x175   : > { %1991 = vadd.xlane.f32.xlu1 %v1989_v23  ;;  %1999 = vst [vmem:[%s3672_s29 + $0x30] sm:$0xf] %v1997_v61  ;;  %v4000_v46 = vsel %vm1319_vm0, %v1763_v33, %v3595_v35  ;;  %v2004_v36 = vadd.s32 %v2003_v32, %v3561_v9  ;;  %v2022_v31 = vstv %s2957_s20  ;;  %v1970_v35 = vsel %vm1967_vm12, %v3944_v1, 0.0 }
 0x176   : > { %2057 = vst [vmem:[%s3672_s29 + $0x7c] sm:$0xf] %v2055_v42  ;;  %v2054_v34 = vpack.c.bf16 %v4000_v46, %v4000_v46  ;;  %v1951_v37 = vsel %vm1948_vm9, %v3931_v49, 0.0  ;;  %v2023_v14 = vadd.s32 %v2022_v31, %v3561_v9  ;;  %v2041_v11 = vstv %s2959_s25 }
 0x177   : > { %1936 = vadd.xlane.f32.xlu2 %v1933_v54  ;;  %1974 = vadd.xlane.f32.xlu0 %v1971_v53  ;;  %vm2005_vm13 = vcmp.lt.s32.totalorder %v2004_v36, 3000  ;;  %v2042_v25 = vadd.s32 %v2041_v11, %v3561_v9  ;;  %v2060_v55 = vstv %s2961_s23 }
 0x178   : > { %2056 = vst [vmem:[%s3672_s29 + $0x3c] sm:$0xf] %v2054_v34  ;;  %v2009_v30 = vsel %vm2005_vm13, %v3936_v56, 0.0  ;;  %vm2024_vm14 = vcmp.lt.s32.totalorder %v2023_v14, 3000  ;;  %v2061_v10 = vadd.s32 %v2060_v55, %v3561_v9  ;;  %v2008_v4 = vsel %vm2005_vm13, %v1752_v44, 0.0 }
 0x179   : > { %v2027_v38 = vsel %vm2024_vm14, %v1756_v45, 0.0  ;;  %v2028_v24 = vsel %vm2024_vm14, %v1758_v18, 0.0  ;;  %vm2043_vm15 = vcmp.lt.s32.totalorder %v2042_v25, 3000 }
 0x17a   : > { %v2046_v12 = vsel %vm2043_vm15, %v1760_v0, 0.0  ;;  %v2047_v15 = vsel %vm2043_vm15, %v1762_v21, 0.0  ;;  %vm2062_vm0 = vcmp.lt.s32.totalorder %v2061_v10, 3000 }
 0x17b   : > { %v2066_v39 = vsel %vm2062_vm0, %v1766_v28, 0.0 }
 0x17d   : > { %1934 = vadd.xlane.f32.xlu1 %v1932_v58 }
 0x17f   : > { %1972 = vadd.xlane.f32.xlu2 %v1970_v35  ;;  %1953 = vadd.xlane.f32.xlu0 %v1951_v37 }
 0x185   : > { %2012 = vadd.xlane.f32.xlu1 %v2009_v30 }
 0x187   : > { %2029 = vadd.xlane.f32.xlu2 %v2027_v38  ;;  %2031 = vadd.xlane.f32.xlu0 %v2028_v24 }
 0x18d   : > { %2048 = vadd.xlane.f32.xlu1 %v2046_v12 }
 0x18f   : > { %2050 = vadd.xlane.f32.xlu2 %v2047_v15  ;;  %2010 = vadd.xlane.f32.xlu0 %v2008_v4 }
 0x195   : > { %2069 = vadd.xlane.f32.xlu1 %v2066_v39 }
 0x196   : > { %3136 = shalt.err (!%p3133_p10)
}
 0x197   : > { %s3220_s20 = smov 1024   ;;  %s3221_s25 = smov 2048   ;;  %v2065_v49 = vsel %vm2062_vm0, %v4000_v46, 0.0  ;;  %vm2077_vm1 = vcmask 1041409   ;;  %vm2080_vm2 = vcmask 58368  }
 0x198   : > { %s3222_s23 = smov 64   ;;  %2067 = vadd.xlane.f32.xlu0 %v2065_v49  ;;  %s2245_s17 = sshll.u32 %s3338_s10, 1 }
 0x199   : > { %2984 = dma.vmem_to_hbm [thread:$0]  (%p3310_p7), %s2101_s24, 2048, %s2103_s27, %s2083_s28, %s3220_s20, %s3221_s25, %s3222_s23  }
 0x19a   : > { %s2795_s21 = sshll.u32 %s3264_s16, 1  ;;  %s219_s27 = scalar_lea.vmem [#allocation8], %s2245_s17 }
 0x19b   : > { %s2115_s24 = scalar_lea.hbm %s4081_s3, %s2795_s21  ;;  %s2117_s28 = sshll.u32 %s219_s27, 4  ;;  %s2118_s28 = int_to_ptr.vmem [resolvable:$true] %s2117_s28 }
 0x19c   : > { %s2119_s30 = sshll.u32 %s2115_s24, 4  ;;  %s2088_s16 = scalar_lea.sflag [#allocation9], %s3338_s10  ;;  %s2120_s30 = int_to_ptr.hbm [resolvable:$true] %s2119_s30 }
 0x19d   : > { %s3151_s7 = sshra.s32 %s2120_s30, 4  ;;  %s3157_s11 = scalar_lea.hbm %s4081_s3, 4  ;;  %s3152_s7 = int_to_ptr.hbm [resolvable:$true] %s3151_s7 }
 0x19e   : > { %s3153_s8 = scalar_lea.hbm %s3152_s7, 2  ;;  %p3158_p3 = scmp.lt.s32.totalorder %s3152_s7, %s4081_s3 }
 0x19f   : > { %p3154_p12 = scmp.ne.s32.totalorder %s3152_s7, %s3153_s8  ;;  %p3159_p5 = scmp.lt.s32.totalorder %s3157_s11, %s3153_s8 }
 0x1a1   : > { %p3155_p13 = pnand %p3154_p12, %p3310_p7  ;;  %p3160_p1 = por %p3159_p5, %p3158_p3 }
 0x1a3   : > { %p3156_p0 = pneg %p3155_p13 }
 0x1a5   : > { %p3161_p4 = pnand %p3160_p1, %p3156_p0 }
 0x1b7   : > { %v1842_v43 = vpop.xlane.xlu1 %1841 }
 0x1b9   : > { %v1840_v56 = vpop.xlane.xlu0 %1839 }
 0x1ba   : > { %v1823_v26 = vpop.xlane.xlu2 %1822 }
 0x1bf   : > { %v1804_v1 = vpop.xlane.xlu1 %1803 }
 0x1c2   : > { %v1821_v57 = vpop.xlane.xlu2 %1820  ;;  %v1784_v50 = vpop.xlane.xlu0 %1783 }
 0x1c3   : > { %v1806_v51 = vadd.f32 %v1804_v1, %v1784_v50 }
 0x1c5   : > { %v1825_v18 = vadd.f32 %v1823_v26, %v1806_v51 }
 0x1c7   : > { %v1802_v40 = vpop.xlane.xlu1 %1801  ;;  %v1844_v52 = vadd.f32 %v1842_v43, %v1825_v18 }
 0x1ca   : > { %v1880_v41 = vpop.xlane.xlu2 %1879  ;;  %v1782_v60 = vpop.xlane.xlu0 %1781 }
 0x1cb   : > { %v1805_v19 = vadd.f32 %v1802_v40, %v1782_v60 }
 0x1cd   : > { %v1824_v48 = vadd.f32 %v1821_v57, %v1805_v19 }
 0x1cf   : > { %v1899_v17 = vpop.xlane.xlu1 %1898  ;;  %v1843_v3 = vadd.f32 %v1840_v56, %v1824_v48 }
 0x1d2   : > { %v1916_v7 = vpop.xlane.xlu2 %1915  ;;  %v1918_v59 = vpop.xlane.xlu0 %1917 }
 0x1d7   : > { %v1878_v22 = vpop.xlane.xlu1 %1877 }
 0x1da   : > { %v1859_v8 = vpop.xlane.xlu2 %1858  ;;  %v1861_v13 = vpop.xlane.xlu0 %1860 }
 0x1db   : > { %v1863_v45 = vadd.f32 %v1861_v13, %v1844_v52  ;;  %v1862_v62 = vadd.f32 %v1859_v8, %v1843_v3 }
 0x1dd   : > { %v1882_v5 = vadd.f32 %v1880_v41, %v1863_v45  ;;  %v1881_v29 = vadd.f32 %v1878_v22, %v1862_v62 }
 0x1df   : > { %v1901_v44 = vadd.f32 %v1899_v17, %v1882_v5 }
 0x1e0   : > { %v1956_v20 = vpop.xlane.xlu1 %1955 }
 0x1e1   : > { %v1920_v6 = vadd.f32 %v1918_v59, %v1901_v44 }
 0x1e2   : > { %v1994_v63 = vpop.xlane.xlu2 %1993  ;;  %v1897_v2 = vpop.xlane.xlu0 %1896 }
 0x1e3   : > { %v1900_v47 = vadd.f32 %v1897_v2, %v1881_v29 }
 0x1e5   : > { %v1919_v33 = vadd.f32 %v1916_v7, %v1900_v47 }
 0x1e8   : > { %v1992_v21 = vpop.xlane.xlu1 %1991 }
 0x1ea   : > { %v1937_v16 = vpop.xlane.xlu2 %1936  ;;  %v1975_v0 = vpop.xlane.xlu0 %1974 }
 0x1eb   : > { %v1939_v28 = vadd.f32 %v1937_v16, %v1920_v6 }
 0x1ed   : > { %v1958_v54 = vadd.f32 %v1956_v20, %v1939_v28 }
 0x1ef   : > { %v1977_v58 = vadd.f32 %v1975_v0, %v1958_v54 }
 0x1f0   : > { %v1935_v61 = vpop.xlane.xlu1 %1934 }
 0x1f1   : > { %v1938_v42 = vadd.f32 %v1935_v61, %v1919_v33  ;;  %v1996_v31 = vadd.f32 %v1994_v63, %v1977_v58 }
 0x1f2   : > { %v1973_v27 = vpop.xlane.xlu2 %1972  ;;  %v1954_v23 = vpop.xlane.xlu0 %1953 }
 0x1f3   : > { %v1957_v46 = vadd.f32 %v1954_v23, %v1938_v42 }
 0x1f5   : > { %v1976_v36 = vadd.f32 %v1973_v27, %v1957_v46 }
 0x1f7   : > { %v1995_v14 = vadd.f32 %v1992_v21, %v1976_v36 }
 0x1f8   : > { %v2013_v53 = vpop.xlane.xlu1 %2012 }
 0x1f9   : > { %v2015_v37 = vadd.f32 %v2013_v53, %v1996_v31 }
 0x1fa   : > { %v2030_v34 = vpop.xlane.xlu2 %2029  ;;  %v2032_v32 = vpop.xlane.xlu0 %2031 }
 0x1fb   : > { %v2034_v24 = vadd.f32 %v2032_v32, %v2015_v37 }
 0x200   : > { %v2049_v35 = vpop.xlane.xlu1 %2048 }
 0x202   : > { %v2011_v30 = vpop.xlane.xlu0 %2010  ;;  %v2051_v38 = vpop.xlane.xlu2 %2050 }
 0x203   : > { %v2014_v11 = vadd.f32 %v2011_v30, %v1995_v14  ;;  %v2053_v55 = vadd.f32 %v2051_v38, %v2034_v24 }
 0x205   : > { %v2033_v25 = vadd.f32 %v2030_v34, %v2014_v11 }
 0x207   : > { %v2052_v15 = vadd.f32 %v2049_v35, %v2033_v25 }
 0x208   : > { %v2070_v12 = vpop.xlane.xlu1 %2069 }
 0x209   : > { %v2072_v10 = vadd.f32 %v2070_v12, %v2053_v55 }
 0x20b   : > { %v2068_v4 = vpop.xlane.xlu0 %2067  ;;  %v2076_v49 = vperm.slane %v2072_v10, %v3561_v9 }
 0x20c   : > { %v2071_v39 = vadd.f32 %v2068_v4, %v2052_v15 }
 0x20e   : > { %v2075_v43 = vperm.slane %v2071_v39, %v3561_v9 }
 0x210   : > { %v2078_v56 = vsel %vm2077_vm1, %v2076_v49, %v2075_v43 }
 0x211   : > { %2081 = vst.msk [vmem:[%s219_s27] sm:$0x3] %vm2080_vm2, %v2078_v56 }
 0x212   : > { %3164 = shalt.err (!%p3161_p4)
}
 0x213   : > { %2985 = dma.vmem_to_hbm [thread:$0]  (%p3310_p7), %s2118_s28, 32, %s2120_s30, %s2088_s16  }
 0x214 PF: > { %s2131_s10 = sand.u32 1, %s3199_s12   ;;  %p4090_p8 = scmp.ge.s32.totalorder %s3211_s15, 2 }
 0x215   : > { %s2132_s25 = scalar_lea.sflag [#allocation4], %s2131_s10 }
 0x216   : > { %p2997_p11 = pnand %p4090_p8, %p3278_p6 }
 0x218   : > { %p2998_p9 = pneg %p2997_p11 }
 0x21a   : > { %3190 = dma.done.wait (%p2998_p9), %s2132_s25, 2048  }
 0x21b   : > { %3192 = vsyncadd (%p2998_p9), %s2132_s25, 4294965248  ;;  %s2142_s23 = scalar_lea.sflag [#allocation9], %s2131_s10 }
 0x21c   : > { %3194 = dma.done.wait (%p2998_p9), %s2142_s23, 32  }
 0x21d   : > { %3196 = vsyncadd (%p2998_p9), %s2142_s23, 4294967264  ;;  %p21_p7 = scmp.ge.s32.totalorder %s3296_s26, 4   ;;  %s4091_s12 = smov %s3203_s13 }
 0x21e   : > { %s4092_s13 = smov %s3207_s14  ;;  %s4093_s14 = smov %s3306_s4 }
 0x21f   : > { %s4094_s15 = smov %s3296_s26  ;;  %23 = sbr.rel (!%p21_p7) target bundleno = 8 (0x8), region = 94 }
 0x224   :  { %2148 = vsyncpa [#allocation3], 1 }
 0x225   :  { %2150 = vsyncpa [#allocation3 + $0x1], 1 }
 0x226   :  { %2151 = vsyncpa [#allocation6], 1 }
 0x227   :  { %2152 = vsyncpa [#allocation4], 1 }
 0x228   :  { %2154 = vsyncpa [#allocation4 + $0x1], 1 }
 0x229   :  { %2155 = vsyncpa [#allocation9], 1 }
 0x22a   :  { %2157 = vsyncpa [#allocation9 + $0x1], 1 }

</bundles_post_ra>
